<compile_context>
chip_gen: v5e
topology: v5e:2x2
jax: 0.10.0
libtpu: 0.0.40
codegen_flags: <defaults>
</compile_context>

<pallas_src>
import jax
import jax.numpy as jnp
from jax.experimental import pallas as pl
from jax.experimental.pallas import tpu as pltpu

EPS = 1e-5


# --------------------------------------------------------------------------- #
# shared in-kernel helpers
# --------------------------------------------------------------------------- #
def _conv3x3_bands(p, w_ref, col_ref):
    """3x3 SAME conv of p (H2, W2, C) bf16 -> f32 (H2*W2, Ct) via 3 MXU dots.

    col_ref: bf16 VMEM scratch (H2+2, W2, 3*C), lane-banded by the W-shift dx.
    w_ref:   bf16 (3, 3*C, Ct) with layout [dy][dx*C + c][cout].
    """
    H2, W2, C = p.shape
    Ct = w_ref.shape[2]
    M = H2 * W2

    # Zero halo (top/bottom rows for all bands, left col for dx=0 band,
    # right col for dx=2 band).  Cheap (~2% of the interior stores).
    zrow = jnp.zeros((1, W2, 3 * C), jnp.bfloat16)
    zcol = jnp.zeros((H2, 1, C), jnp.bfloat16)
    col_ref[0:1] = zrow
    col_ref[H2 + 1:H2 + 2] = zrow
    col_ref[1:H2 + 1, 0:1, 0:C] = zcol
    col_ref[1:H2 + 1, W2 - 1:W2, 2 * C:3 * C] = zcol

    # Interior: the three W-shifted copies of p -- the only sublane-crossing
    # stores in the whole conv (was 9 shifted load+store relayouts before).
    col_ref[1:H2 + 1, 1:W2, 0:C] = p[:, 0:W2 - 1, :]          # dx = 0
    col_ref[1:H2 + 1, :, C:2 * C] = p                          # dx = 1
    col_ref[1:H2 + 1, 0:W2 - 1, 2 * C:3 * C] = p[:, 1:W2, :]   # dx = 2

    # dy slicing is a free leading-dim view; 3 deep (K = 3*C) bf16 MXU dots
    # with f32 accumulation.
    acc = jnp.zeros((M, Ct), jnp.float32)
    for dy in range(3):
        slab = col_ref[dy:dy + H2].reshape(M, 3 * C)
        acc = acc + jnp.dot(slab, w_ref[dy], preferred_element_type=jnp.float32)
    return acc


def _emit_out_and_stats(acc, y_ref, st_ref):
    """Write raw bf16 conv output + lane-dense f32 [sum | centered sumsq]."""
    M = acc.shape[0]
    y_ref[0] = acc.astype(y_ref.dtype)
    s = jnp.sum(acc, axis=0, keepdims=True)                    # (1, Ct)
    mean = s / M
    q = jnp.sum((acc - mean) ** 2, axis=0, keepdims=True)      # centered sumsq
    st_ref[0, 0] = jnp.concatenate([s, q], axis=-1)            # (1, 2*Ct)


# --------------------------------------------------------------------------- #
# phase 1: 2x2 max-pool + conv1 (raw bf16) + BN1 partial stats
# --------------------------------------------------------------------------- #
def pool_conv1_kernel(x_ref, w_ref, y_ref, st_ref, col_ref):
    C = col_ref.shape[2] // 3                 # Cin
    v = x_ref[...]                            # (H2, 2, W2, 2*Cin) bf16
    # W-direction pool: the two W-phases live in lane halves [0:C] / [C:2C].
    a = jnp.maximum(v[..., :C], v[..., C:])   # (H2, 2, W2, Cin)
    # H-direction pool: the two H-phases are a leading dim.
    p = jnp.maximum(a[:, 0], a[:, 1])         # (H2, W2, Cin)
    acc = _conv3x3_bands(p, w_ref, col_ref)
    _emit_out_and_stats(acc, y_ref, st_ref)


# --------------------------------------------------------------------------- #
# phase 2: apply BN1 scale/shift + ReLU, then conv2 (raw bf16) + BN2 partials
# --------------------------------------------------------------------------- #
def bn1_conv2_kernel(y1_ref, sc_ref, sh_ref, w_ref, y_ref, st_ref, col_ref):
    H2 = col_ref.shape[0] - 2
    W2 = col_ref.shape[1]
    C1 = col_ref.shape[2] // 3
    h = jnp.maximum(y1_ref[0].astype(jnp.float32) * sc_ref[...] + sh_ref[...],
                    0.0)                                        # (M, C1) f32
    p = h.astype(jnp.bfloat16).reshape(H2, W2, C1)
    acc = _conv3x3_bands(p, w_ref, col_ref)
    _emit_out_and_stats(acc, y_ref, st_ref)


# --------------------------------------------------------------------------- #
# wrapper
# --------------------------------------------------------------------------- #
def _cout_tile(c):
    """Output-channel tile: keep full Cout up to 256 (MXU width on v6e/v7x)."""
    return c if (c <= 256 or c % 256 != 0) else 256


def _bn_affine(stats, gamma, beta, m_per_tile):
    """Combine per-tile [sum | centered sumsq] (Chan/Welford) -> scale/shift."""
    n, n_co, _, two_ct = stats.shape
    ct = two_ct // 2
    s = stats[:, :, 0, :ct]                 # (N, n_co, Ct)  per-tile sums
    q = stats[:, :, 0, ct:]                 # per-tile centered sum of squares
    count = n * m_per_tile
    mean = jnp.sum(s, axis=0) / count                               # (n_co, Ct)
    m2 = jnp.sum(q, axis=0) + m_per_tile * jnp.sum((s / m_per_tile - mean) ** 2,
                                                   axis=0)
    var = m2 / count                        # biased variance (torch BN training)
    mean = mean.reshape(-1)
    var = var.reshape(-1)
    scale = gamma * jax.lax.rsqrt(var + EPS)
    shift = beta - mean * scale
    return scale.reshape(1, -1), shift.reshape(1, -1)


def down_forward(x_nchw, params):
    """Down.forward.  x_nchw: (N, Cin, H, W) -> (N, Cout, H//2, W//2)."""
    w1, b1, g1, be1, w2, b2, g2, be2 = params
    del b1, b2   # exactly cancelled by training-mode BN mean subtraction
    N, Cin, H, W = x_nchw.shape
    assert H % 2 == 0 and W % 2 == 0, "2x2/stride-2 pool needs even H, W"
    H2, W2 = H // 2, W // 2
    M = H2 * W2
    C1 = w1.shape[-1]
    C2 = w2.shape[-1]
    ct1, ct2 = _cout_tile(C1), _cout_tile(C2)
    nco1, nco2 = C1 // ct1, C2 // ct2

    # bf16 activations & weights into the MXU; NHWC + free reshape folds the
    # two pool phases so the kernel never needs strided minor-dim access.
    x = jnp.transpose(x_nchw, (0, 2, 3, 1)).astype(jnp.bfloat16)   # (N,H,W,Cin)
    x4 = x.reshape(N * H2, 2, W2, 2 * Cin)
    # (3, 3, Ci, Co) -> (3, 3*Ci, Co): row-major reshape gives [dy][dx*Ci+c][o].
    w1r = w1.reshape(3, 3 * Cin, C1).astype(jnp.bfloat16)
    w2r = w2.reshape(3, 3 * C1, C2).astype(jnp.bfloat16)

    cp = pltpu.CompilerParams(
        dimension_semantics=("parallel", "parallel"),   # batch x Cout-tiles
        vmem_limit_bytes=48 * 1024 * 1024,              # headroom on v7x 64 MiB
    )

    # ---- phase 1: pool + conv1 (raw bf16) + BN1 partials ---------------------
    y1, st1 = pl.pallas_call(
        pool_conv1_kernel,
        grid=(N, nco1),
        in_specs=[
            pl.BlockSpec((H2, 2, W2, 2 * Cin), lambda n, co: (n, 0, 0, 0)),
            pl.BlockSpec((3, 3 * Cin, ct1), lambda n, co: (0, 0, co)),
        ],
        out_specs=[
            pl.BlockSpec((1, M, ct1), lambda n, co: (n, 0, co)),
            pl.BlockSpec((1, 1, 1, 2 * ct1), lambda n, co: (n, co, 0, 0)),
        ],
        out_shape=[
            jax.ShapeDtypeStruct((N, M, C1), jnp.bfloat16),
            jax.ShapeDtypeStruct((N, nco1, 1, 2 * ct1), jnp.float32),
        ],
        scratch_shapes=[pltpu.VMEM((H2 + 2, W2, 3 * Cin), jnp.bfloat16)],
        compiler_params=cp,
    )(x4, w1r)

    sc1, sh1 = _bn_affine(st1, g1, be1, M)

    # ---- phase 2: BN1 + ReLU -> conv2 (raw bf16) + BN2 partials --------------
    y2, st2 = pl.pallas_call(
        bn1_conv2_kernel,
        grid=(N, nco2),
        in_specs=[
            pl.BlockSpec((1, M, C1), lambda n, co: (n, 0, 0)),
            pl.BlockSpec((1, C1), lambda n, co: (0, 0)),
            pl.BlockSpec((1, C1), lambda n, co: (0, 0)),
            pl.BlockSpec((3, 3 * C1, ct2), lambda n, co: (0, 0, co)),
        ],
        out_specs=[
            pl.BlockSpec((1, M, ct2), lambda n, co: (n, 0, co)),
            pl.BlockSpec((1, 1, 1, 2 * ct2), lambda n, co: (n, co, 0, 0)),
        ],
        out_shape=[
            jax.ShapeDtypeStruct((N, M, C2), jnp.bfloat16),
            jax.ShapeDtypeStruct((N, nco2, 1, 2 * ct2), jnp.float32),
        ],
        scratch_shapes=[pltpu.VMEM((H2 + 2, W2, 3 * C1), jnp.bfloat16)],
        compiler_params=cp,
    )(y1, sc1, sh1, w2r)

    sc2, sh2 = _bn_affine(st2, g2, be2, M)

    # ---- epilogue: BN2 scale/shift + ReLU fused by XLA with the transpose ----
    out = jnp.maximum(y2.astype(jnp.float32) * sc2 + sh2, 0.0)
    out = out.reshape(N, H2, W2, C2)
    return jnp.transpose(out, (0, 3, 1, 2))                      # back to NCHW


# --------------------------------------------------------------------------- #
# pure-JAX f32 reference (lax.conv, training-mode BN semantics, WITH biases)
# --------------------------------------------------------------------------- #
def down_reference(x_nchw, params):
    w1, b1, g1, be1, w2, b2, g2, be2 = params
    N, C, H, W = x_nchw.shape
    xp = x_nchw.reshape(N, C, H // 2, 2, W // 2, 2).max(axis=(3, 5))
    z = jnp.transpose(xp, (0, 2, 3, 1))  # NHWC

    def conv_bn_relu(z, w_hwio, b, g, be):
        y = jax.lax.conv_general_dilated(
            z, w_hwio, window_strides=(1, 1), padding="SAME",
            dimension_numbers=("NHWC", "HWIO", "NHWC")) + b
        mean = y.mean(axis=(0, 1, 2))
        var = ((y - mean) ** 2).mean(axis=(0, 1, 2))
        y = (y - mean) / jnp.sqrt(var + EPS) * g + be
        return jnp.maximum(y, 0.0)

    z = conv_bn_relu(z, w1, b1, g1, be1)
    z = conv_bn_relu(z, w2, b2, g2, be2)
    return jnp.transpose(z, (0, 3, 1, 2))  # NCHW


if __name__ == "__main__":
    N, Cin, Cout, H, W = 2, 4, 8, 16, 16

    key = jax.random.PRNGKey(0)
    ks = jax.random.split(key, 11)
    x = jax.random.normal(ks[0], (N, Cin, H, W), jnp.float32)

    # Deterministic synthetic parameters (shapes per nn.Conv2d / nn.BatchNorm2d).
    w1 = jax.random.normal(ks[1], (3, 3, Cin, Cout), jnp.float32) * 0.2   # HWIO
    b1 = jax.random.normal(ks[2], (Cout,), jnp.float32) * 0.1
    g1 = 1.0 + 0.1 * jax.random.normal(ks[3], (Cout,), jnp.float32)
    be1 = 0.1 * jax.random.normal(ks[4], (Cout,), jnp.float32)
    w2 = jax.random.normal(ks[5], (3, 3, Cout, Cout), jnp.float32) * 0.2  # HWIO
    b2 = jax.random.normal(ks[6], (Cout,), jnp.float32) * 0.1
    g2 = 1.0 + 0.1 * jax.random.normal(ks[7], (Cout,), jnp.float32)
    be2 = 0.1 * jax.random.normal(ks[8], (Cout,), jnp.float32)
    params = (w1, b1, g1, be1, w2, b2, g2, be2)

    out = jax.block_until_ready(jax.jit(down_forward)(x, params))
    ref = jax.block_until_ready(down_reference(x, params))

    assert out.shape == (N, Cout, H // 2, W // 2), out.shape
    # bf16 MXU operands + bf16 inter-phase activations => ~1% relative error
    # against the f32 reference; tolerance loosened accordingly (review note).
    err = float(jnp.max(jnp.abs(out - ref)))
    assert err < 1.2e-1, err
    print("KERNEL_OK")
</pallas_src>

<mosaic_0001>
module attributes {stable_mosaic.version = 11 : i64} {
  func.func @pool_conv1_kernel(%arg0: i32, %arg1: i32, %arg2: memref<8x2x8x8xbf16, #tpu.memory_space<vmem>>, %arg3: memref<3x12x8xbf16, #tpu.memory_space<vmem>>, %arg4: memref<1x64x8xbf16, #tpu.memory_space<vmem>>, %arg5: memref<1x1x1x16xf32, #tpu.memory_space<vmem>>, %arg6: memref<10x8x12xbf16, #tpu.memory_space<vmem>>) attributes {dimension_semantics = [#tpu.dimension_semantics<parallel>, #tpu.dimension_semantics<parallel>], iteration_bounds = array<i64: 2, 1>, scalar_prefetch = 0 : i64, scratch_operands = 1 : i64, tpu.core_type = #tpu.core_type<tc>, window_params = [{transform_indices = @transform_0, window_bounds = array<i64: 8, 2, 8, 8>}, {transform_indices = @transform_1, window_bounds = array<i64: 3, 12, 8>}, {transform_indices = @transform_2, window_bounds = array<i64: 1, 64, 8>}, {transform_indices = @transform_3, window_bounds = array<i64: 1, 1, 1, 16>}]} {
    %c0 = arith.constant 0 : index
    %c0_0 = arith.constant 0 : index
    %c0_1 = arith.constant 0 : index
    %c0_2 = arith.constant 0 : index
    %0 = vector.load %arg2[%c0, %c0_0, %c0_1, %c0_2] : memref<8x2x8x8xbf16, #tpu.memory_space<vmem>>, vector<8x2x8x8xbf16>
    %1 = vector.extract_strided_slice %0 {offsets = [0, 0, 0, 0], sizes = [8, 2, 8, 4], strides = [1, 1, 1, 1]} : vector<8x2x8x8xbf16> to vector<8x2x8x4xbf16>
    %2 = vector.extract_strided_slice %0 {offsets = [0, 0, 0, 4], sizes = [8, 2, 8, 4], strides = [1, 1, 1, 1]} : vector<8x2x8x8xbf16> to vector<8x2x8x4xbf16>
    %3 = arith.maximumf %1, %2 : vector<8x2x8x4xbf16>
    %4 = vector.extract_strided_slice %3 {offsets = [0, 0, 0, 0], sizes = [8, 1, 8, 4], strides = [1, 1, 1, 1]} : vector<8x2x8x4xbf16> to vector<8x1x8x4xbf16>
    %5 = vector.shape_cast %4 : vector<8x1x8x4xbf16> to vector<8x8x4xbf16>
    %6 = vector.extract_strided_slice %3 {offsets = [0, 1, 0, 0], sizes = [8, 1, 8, 4], strides = [1, 1, 1, 1]} : vector<8x2x8x4xbf16> to vector<8x1x8x4xbf16>
    %7 = vector.shape_cast %6 : vector<8x1x8x4xbf16> to vector<8x8x4xbf16>
    %8 = arith.maximumf %5, %7 : vector<8x8x4xbf16>
    %cst = arith.constant 0.000000e+00 : bf16
    %9 = vector.broadcast %cst : bf16 to vector<1x8x12xbf16>
    %cst_3 = arith.constant 0.000000e+00 : bf16
    %10 = vector.broadcast %cst_3 : bf16 to vector<8x1x4xbf16>
    %c0_4 = arith.constant 0 : index
    %c0_5 = arith.constant 0 : index
    %c0_6 = arith.constant 0 : index
    %11 = vector.load %arg6[%c0_4, %c0_5, %c0_6] : memref<10x8x12xbf16, #tpu.memory_space<vmem>>, vector<1x8x12xbf16>
    tpu.vector_store %arg6[%c0_4, %c0_5, %c0_6], %9 {strides = array<i32>} : memref<10x8x12xbf16, #tpu.memory_space<vmem>>, vector<1x8x12xbf16>,
    %c9 = arith.constant 9 : index
    %c0_7 = arith.constant 0 : index
    %c0_8 = arith.constant 0 : index
    %12 = vector.load %arg6[%c9, %c0_7, %c0_8] : memref<10x8x12xbf16, #tpu.memory_space<vmem>>, vector<1x8x12xbf16>
    tpu.vector_store %arg6[%c9, %c0_7, %c0_8], %9 {strides = array<i32>} : memref<10x8x12xbf16, #tpu.memory_space<vmem>>, vector<1x8x12xbf16>,
    %c1 = arith.constant 1 : index
    %c0_9 = arith.constant 0 : index
    %c0_10 = arith.constant 0 : index
    %13 = vector.load %arg6[%c1, %c0_9, %c0_10] : memref<10x8x12xbf16, #tpu.memory_space<vmem>>, vector<8x1x4xbf16>
    tpu.vector_store %arg6[%c1, %c0_9, %c0_10], %10 {strides = array<i32>} : memref<10x8x12xbf16, #tpu.memory_space<vmem>>, vector<8x1x4xbf16>,
    %c1_11 = arith.constant 1 : index
    %c7 = arith.constant 7 : index
    %c8 = arith.constant 8 : index
    %14 = vector.load %arg6[%c1_11, %c7, %c8] : memref<10x8x12xbf16, #tpu.memory_space<vmem>>, vector<8x1x4xbf16>
    tpu.vector_store %arg6[%c1_11, %c7, %c8], %10 {strides = array<i32>} : memref<10x8x12xbf16, #tpu.memory_space<vmem>>, vector<8x1x4xbf16>,
    %15 = vector.extract_strided_slice %8 {offsets = [0, 0, 0], sizes = [8, 7, 4], strides = [1, 1, 1]} : vector<8x8x4xbf16> to vector<8x7x4xbf16>
    %c1_12 = arith.constant 1 : index
    %c1_13 = arith.constant 1 : index
    %c0_14 = arith.constant 0 : index
    %16 = vector.load %arg6[%c1_12, %c1_13, %c0_14] : memref<10x8x12xbf16, #tpu.memory_space<vmem>>, vector<8x7x4xbf16>
    tpu.vector_store %arg6[%c1_12, %c1_13, %c0_14], %15 {strides = array<i32>} : memref<10x8x12xbf16, #tpu.memory_space<vmem>>, vector<8x7x4xbf16>,
    %c1_15 = arith.constant 1 : index
    %c0_16 = arith.constant 0 : index
    %c4 = arith.constant 4 : index
    %17 = vector.load %arg6[%c1_15, %c0_16, %c4] : memref<10x8x12xbf16, #tpu.memory_space<vmem>>, vector<8x8x4xbf16>
    tpu.vector_store %arg6[%c1_15, %c0_16, %c4], %8 {strides = array<i32>} : memref<10x8x12xbf16, #tpu.memory_space<vmem>>, vector<8x8x4xbf16>,
    %18 = vector.extract_strided_slice %8 {offsets = [0, 1, 0], sizes = [8, 7, 4], strides = [1, 1, 1]} : vector<8x8x4xbf16> to vector<8x7x4xbf16>
    %c1_17 = arith.constant 1 : index
    %c0_18 = arith.constant 0 : index
    %c8_19 = arith.constant 8 : index
    %19 = vector.load %arg6[%c1_17, %c0_18, %c8_19] : memref<10x8x12xbf16, #tpu.memory_space<vmem>>, vector<8x7x4xbf16>
    tpu.vector_store %arg6[%c1_17, %c0_18, %c8_19], %18 {strides = array<i32>} : memref<10x8x12xbf16, #tpu.memory_space<vmem>>, vector<8x7x4xbf16>,
    %cst_20 = arith.constant 0.000000e+00 : f32
    %20 = vector.broadcast %cst_20 : f32 to vector<64x8xf32>
    %c0_21 = arith.constant 0 : index
    %c0_22 = arith.constant 0 : index
    %c0_23 = arith.constant 0 : index
    %21 = vector.load %arg6[%c0_21, %c0_22, %c0_23] : memref<10x8x12xbf16, #tpu.memory_space<vmem>>, vector<8x8x12xbf16>
    %22 = vector.shape_cast %21 : vector<8x8x12xbf16> to vector<64x12xbf16>
    %c0_24 = arith.constant 0 : index
    %c0_25 = arith.constant 0 : index
    %c0_26 = arith.constant 0 : index
    %23 = vector.load %arg3[%c0_24, %c0_25, %c0_26] : memref<3x12x8xbf16, #tpu.memory_space<vmem>>, vector<1x12x8xbf16>
    %24 = vector.shape_cast %23 : vector<1x12x8xbf16> to vector<12x8xbf16>
    %cst_27 = arith.constant dense<0.000000e+00> : vector<64x8xf32>
    %25 = tpu.matmul %22, %24, %cst_27 {dimension_numbers = #tpu.dot_dimension_numbers<[1], [0], [0], [1], [0, 0, 1, 1], [], []>} : vector<64x12xbf16>, vector<12x8xbf16>, vector<64x8xf32> -> vector<64x8xf32>
    %26 = arith.addf %20, %25 : vector<64x8xf32>
    %c1_28 = arith.constant 1 : index
    %c0_29 = arith.constant 0 : index
    %c0_30 = arith.constant 0 : index
    %27 = vector.load %arg6[%c1_28, %c0_29, %c0_30] : memref<10x8x12xbf16, #tpu.memory_space<vmem>>, vector<8x8x12xbf16>
    %28 = vector.shape_cast %27 : vector<8x8x12xbf16> to vector<64x12xbf16>
    %c1_31 = arith.constant 1 : index
    %c0_32 = arith.constant 0 : index
    %c0_33 = arith.constant 0 : index
    %29 = vector.load %arg3[%c1_31, %c0_32, %c0_33] : memref<3x12x8xbf16, #tpu.memory_space<vmem>>, vector<1x12x8xbf16>
    %30 = vector.shape_cast %29 : vector<1x12x8xbf16> to vector<12x8xbf16>
    %cst_34 = arith.constant dense<0.000000e+00> : vector<64x8xf32>
    %31 = tpu.matmul %28, %30, %cst_34 {dimension_numbers = #tpu.dot_dimension_numbers<[1], [0], [0], [1], [0, 0, 1, 1], [], []>} : vector<64x12xbf16>, vector<12x8xbf16>, vector<64x8xf32> -> vector<64x8xf32>
    %32 = arith.addf %26, %31 : vector<64x8xf32>
    %c2 = arith.constant 2 : index
    %c0_35 = arith.constant 0 : index
    %c0_36 = arith.constant 0 : index
    %33 = vector.load %arg6[%c2, %c0_35, %c0_36] : memref<10x8x12xbf16, #tpu.memory_space<vmem>>, vector<8x8x12xbf16>
    %34 = vector.shape_cast %33 : vector<8x8x12xbf16> to vector<64x12xbf16>
    %c2_37 = arith.constant 2 : index
    %c0_38 = arith.constant 0 : index
    %c0_39 = arith.constant 0 : index
    %35 = vector.load %arg3[%c2_37, %c0_38, %c0_39] : memref<3x12x8xbf16, #tpu.memory_space<vmem>>, vector<1x12x8xbf16>
    %36 = vector.shape_cast %35 : vector<1x12x8xbf16> to vector<12x8xbf16>
    %cst_40 = arith.constant dense<0.000000e+00> : vector<64x8xf32>
    %37 = tpu.matmul %34, %36, %cst_40 {dimension_numbers = #tpu.dot_dimension_numbers<[1], [0], [0], [1], [0, 0, 1, 1], [], []>} : vector<64x12xbf16>, vector<12x8xbf16>, vector<64x8xf32> -> vector<64x8xf32>
    %38 = arith.addf %32, %37 : vector<64x8xf32>
    %39 = arith.truncf %38 : vector<64x8xf32> to vector<64x8xbf16>
    %c0_41 = arith.constant 0 : index
    %c0_42 = arith.constant 0 : index
    %c0_43 = arith.constant 0 : index
    %40 = vector.load %arg4[%c0_41, %c0_42, %c0_43] : memref<1x64x8xbf16, #tpu.memory_space<vmem>>, vector<1x64x8xbf16>
    %41 = vector.shape_cast %40 : vector<1x64x8xbf16> to vector<64x8xbf16>
    %42 = vector.shape_cast %39 : vector<64x8xbf16> to vector<1x64x8xbf16>
    tpu.vector_store %arg4[%c0_41, %c0_42, %c0_43], %42 {strides = array<i32>} : memref<1x64x8xbf16, #tpu.memory_space<vmem>>, vector<1x64x8xbf16>,
    %cst_44 = arith.constant dense<0.000000e+00> : vector<8xf32>
    %43 = vector.multi_reduction <add>, %38, %cst_44 [0] : vector<64x8xf32> to vector<8xf32>
    %44 = vector.shape_cast %43 : vector<8xf32> to vector<1x8xf32>
    %cst_45 = arith.constant 6.400000e+01 : f32
    %45 = vector.broadcast %cst_45 : f32 to vector<1x8xf32>
    %46 = arith.divf %44, %45 : vector<1x8xf32>
    %47 = vector.broadcast %46 : vector<1x8xf32> to vector<64x8xf32>
    %48 = arith.subf %38, %47 : vector<64x8xf32>
    %49 = arith.mulf %48, %48 : vector<64x8xf32>
    %cst_46 = arith.constant dense<0.000000e+00> : vector<8xf32>
    %50 = vector.multi_reduction <add>, %49, %cst_46 [0] : vector<64x8xf32> to vector<8xf32>
    %51 = vector.shape_cast %50 : vector<8xf32> to vector<1x8xf32>
    %52 = tpu.concatenate %44, %51 in 1 : vector<1x8xf32>, vector<1x8xf32> -> vector<1x16xf32>
    %c0_47 = arith.constant 0 : index
    %c0_48 = arith.constant 0 : index
    %c0_49 = arith.constant 0 : index
    %c0_50 = arith.constant 0 : index
    %53 = vector.load %arg5[%c0_47, %c0_48, %c0_49, %c0_50] : memref<1x1x1x16xf32, #tpu.memory_space<vmem>>, vector<1x1x1x16xf32>
    %54 = vector.shape_cast %53 : vector<1x1x1x16xf32> to vector<1x16xf32>
    %55 = vector.shape_cast %52 : vector<1x16xf32> to vector<1x1x1x16xf32>
    tpu.vector_store %arg5[%c0_47, %c0_48, %c0_49, %c0_50], %55 {strides = array<i32>} : memref<1x1x1x16xf32, #tpu.memory_space<vmem>>, vector<1x1x1x16xf32>,
    return
  }
  func.func @transform_0(%arg0: i32, %arg1: i32) -> (i32, i32, i32, i32) {
    %c0_i32 = arith.constant 0 : i32
    %c0_i32_0 = arith.constant 0 : i32
    %c0_i32_1 = arith.constant 0 : i32
    %c0_i32_2 = arith.constant 0 : i32
    return %arg0, %c0_i32, %c0_i32_0, %c0_i32_1 : i32, i32, i32, i32
  }
  func.func @transform_1(%arg0: i32, %arg1: i32) -> (i32, i32, i32) {
    %c0_i32 = arith.constant 0 : i32
    %c0_i32_0 = arith.constant 0 : i32
    %c0_i32_1 = arith.constant 0 : i32
    return %c0_i32, %c0_i32_0, %arg1 : i32, i32, i32
  }
  func.func @transform_2(%arg0: i32, %arg1: i32) -> (i32, i32, i32) {
    %c0_i32 = arith.constant 0 : i32
    %c0_i32_0 = arith.constant 0 : i32
    return %arg0, %c0_i32, %arg1 : i32, i32, i32
  }
  func.func @transform_3(%arg0: i32, %arg1: i32) -> (i32, i32, i32, i32) {
    %c0_i32 = arith.constant 0 : i32
    %c0_i32_0 = arith.constant 0 : i32
    %c0_i32_1 = arith.constant 0 : i32
    return %arg0, %arg1, %c0_i32, %c0_i32_0 : i32, i32, i32, i32
  }
}

module attributes {stable_mosaic.version = 11 : i64} {
  func.func @bn1_conv2_kernel(%arg0: i32, %arg1: i32, %arg2: memref<1x64x8xbf16, #tpu.memory_space<vmem>>, %arg3: memref<1x8xf32, #tpu.memory_space<vmem>>, %arg4: memref<1x8xf32, #tpu.memory_space<vmem>>, %arg5: memref<3x24x8xbf16, #tpu.memory_space<vmem>>, %arg6: memref<1x64x8xbf16, #tpu.memory_space<vmem>>, %arg7: memref<1x1x1x16xf32, #tpu.memory_space<vmem>>, %arg8: memref<10x8x24xbf16, #tpu.memory_space<vmem>>) attributes {dimension_semantics = [#tpu.dimension_semantics<parallel>, #tpu.dimension_semantics<parallel>], iteration_bounds = array<i64: 2, 1>, scalar_prefetch = 0 : i64, scratch_operands = 1 : i64, tpu.core_type = #tpu.core_type<tc>, window_params = [{transform_indices = @transform_0, window_bounds = array<i64: 1, 64, 8>}, {pipeline_mode = #tpu.pipeline_mode<synchronous>, transform_indices = @transform_1, window_bounds = array<i64: 1, 8>}, {pipeline_mode = #tpu.pipeline_mode<synchronous>, transform_indices = @transform_2, window_bounds = array<i64: 1, 8>}, {transform_indices = @transform_3, window_bounds = array<i64: 3, 24, 8>}, {transform_indices = @transform_4, window_bounds = array<i64: 1, 64, 8>}, {transform_indices = @transform_5, window_bounds = array<i64: 1, 1, 1, 16>}]} {
    %c0 = arith.constant 0 : index
    %c0_0 = arith.constant 0 : index
    %c0_1 = arith.constant 0 : index
    %0 = vector.load %arg2[%c0, %c0_0, %c0_1] : memref<1x64x8xbf16, #tpu.memory_space<vmem>>, vector<1x64x8xbf16>
    %1 = vector.shape_cast %0 : vector<1x64x8xbf16> to vector<64x8xbf16>
    %2 = arith.extf %1 : vector<64x8xbf16> to vector<64x8xf32>
    %c0_2 = arith.constant 0 : index
    %c0_3 = arith.constant 0 : index
    %3 = vector.load %arg3[%c0_2, %c0_3] : memref<1x8xf32, #tpu.memory_space<vmem>>, vector<1x8xf32>
    %4 = vector.broadcast %3 : vector<1x8xf32> to vector<64x8xf32>
    %5 = arith.mulf %2, %4 : vector<64x8xf32>
    %c0_4 = arith.constant 0 : index
    %c0_5 = arith.constant 0 : index
    %6 = vector.load %arg4[%c0_4, %c0_5] : memref<1x8xf32, #tpu.memory_space<vmem>>, vector<1x8xf32>
    %7 = vector.broadcast %6 : vector<1x8xf32> to vector<64x8xf32>
    %8 = arith.addf %5, %7 : vector<64x8xf32>
    %cst = arith.constant 0.000000e+00 : f32
    %9 = vector.broadcast %cst : f32 to vector<64x8xf32>
    %10 = arith.maximumf %8, %9 : vector<64x8xf32>
    %11 = arith.truncf %10 : vector<64x8xf32> to vector<64x8xbf16>
    %12 = vector.shape_cast %11 : vector<64x8xbf16> to vector<8x8x8xbf16>
    %cst_6 = arith.constant 0.000000e+00 : bf16
    %13 = vector.broadcast %cst_6 : bf16 to vector<1x8x24xbf16>
    %cst_7 = arith.constant 0.000000e+00 : bf16
    %14 = vector.broadcast %cst_7 : bf16 to vector<8x1x8xbf16>
    %c0_8 = arith.constant 0 : index
    %c0_9 = arith.constant 0 : index
    %c0_10 = arith.constant 0 : index
    %15 = vector.load %arg8[%c0_8, %c0_9, %c0_10] : memref<10x8x24xbf16, #tpu.memory_space<vmem>>, vector<1x8x24xbf16>
    tpu.vector_store %arg8[%c0_8, %c0_9, %c0_10], %13 {strides = array<i32>} : memref<10x8x24xbf16, #tpu.memory_space<vmem>>, vector<1x8x24xbf16>,
    %c9 = arith.constant 9 : index
    %c0_11 = arith.constant 0 : index
    %c0_12 = arith.constant 0 : index
    %16 = vector.load %arg8[%c9, %c0_11, %c0_12] : memref<10x8x24xbf16, #tpu.memory_space<vmem>>, vector<1x8x24xbf16>
    tpu.vector_store %arg8[%c9, %c0_11, %c0_12], %13 {strides = array<i32>} : memref<10x8x24xbf16, #tpu.memory_space<vmem>>, vector<1x8x24xbf16>,
    %c1 = arith.constant 1 : index
    %c0_13 = arith.constant 0 : index
    %c0_14 = arith.constant 0 : index
    %17 = vector.load %arg8[%c1, %c0_13, %c0_14] : memref<10x8x24xbf16, #tpu.memory_space<vmem>>, vector<8x1x8xbf16>
    tpu.vector_store %arg8[%c1, %c0_13, %c0_14], %14 {strides = array<i32>} : memref<10x8x24xbf16, #tpu.memory_space<vmem>>, vector<8x1x8xbf16>,
    %c1_15 = arith.constant 1 : index
    %c7 = arith.constant 7 : index
    %c16 = arith.constant 16 : index
    %18 = vector.load %arg8[%c1_15, %c7, %c16] : memref<10x8x24xbf16, #tpu.memory_space<vmem>>, vector<8x1x8xbf16>
    tpu.vector_store %arg8[%c1_15, %c7, %c16], %14 {strides = array<i32>} : memref<10x8x24xbf16, #tpu.memory_space<vmem>>, vector<8x1x8xbf16>,
    %19 = vector.extract_strided_slice %12 {offsets = [0, 0, 0], sizes = [8, 7, 8], strides = [1, 1, 1]} : vector<8x8x8xbf16> to vector<8x7x8xbf16>
    %c1_16 = arith.constant 1 : index
    %c1_17 = arith.constant 1 : index
    %c0_18 = arith.constant 0 : index
    %20 = vector.load %arg8[%c1_16, %c1_17, %c0_18] : memref<10x8x24xbf16, #tpu.memory_space<vmem>>, vector<8x7x8xbf16>
    tpu.vector_store %arg8[%c1_16, %c1_17, %c0_18], %19 {strides = array<i32>} : memref<10x8x24xbf16, #tpu.memory_space<vmem>>, vector<8x7x8xbf16>,
    %c1_19 = arith.constant 1 : index
    %c0_20 = arith.constant 0 : index
    %c8 = arith.constant 8 : index
    %21 = vector.load %arg8[%c1_19, %c0_20, %c8] : memref<10x8x24xbf16, #tpu.memory_space<vmem>>, vector<8x8x8xbf16>
    tpu.vector_store %arg8[%c1_19, %c0_20, %c8], %12 {strides = array<i32>} : memref<10x8x24xbf16, #tpu.memory_space<vmem>>, vector<8x8x8xbf16>,
    %22 = vector.extract_strided_slice %12 {offsets = [0, 1, 0], sizes = [8, 7, 8], strides = [1, 1, 1]} : vector<8x8x8xbf16> to vector<8x7x8xbf16>
    %c1_21 = arith.constant 1 : index
    %c0_22 = arith.constant 0 : index
    %c16_23 = arith.constant 16 : index
    %23 = vector.load %arg8[%c1_21, %c0_22, %c16_23] : memref<10x8x24xbf16, #tpu.memory_space<vmem>>, vector<8x7x8xbf16>
    tpu.vector_store %arg8[%c1_21, %c0_22, %c16_23], %22 {strides = array<i32>} : memref<10x8x24xbf16, #tpu.memory_space<vmem>>, vector<8x7x8xbf16>,
    %cst_24 = arith.constant 0.000000e+00 : f32
    %24 = vector.broadcast %cst_24 : f32 to vector<64x8xf32>
    %c0_25 = arith.constant 0 : index
    %c0_26 = arith.constant 0 : index
    %c0_27 = arith.constant 0 : index
    %25 = vector.load %arg8[%c0_25, %c0_26, %c0_27] : memref<10x8x24xbf16, #tpu.memory_space<vmem>>, vector<8x8x24xbf16>
    %26 = vector.shape_cast %25 : vector<8x8x24xbf16> to vector<64x24xbf16>
    %c0_28 = arith.constant 0 : index
    %c0_29 = arith.constant 0 : index
    %c0_30 = arith.constant 0 : index
    %27 = vector.load %arg5[%c0_28, %c0_29, %c0_30] : memref<3x24x8xbf16, #tpu.memory_space<vmem>>, vector<1x24x8xbf16>
    %28 = vector.shape_cast %27 : vector<1x24x8xbf16> to vector<24x8xbf16>
    %cst_31 = arith.constant dense<0.000000e+00> : vector<64x8xf32>
    %29 = tpu.matmul %26, %28, %cst_31 {dimension_numbers = #tpu.dot_dimension_numbers<[1], [0], [0], [1], [0, 0, 1, 1], [], []>} : vector<64x24xbf16>, vector<24x8xbf16>, vector<64x8xf32> -> vector<64x8xf32>
    %30 = arith.addf %24, %29 : vector<64x8xf32>
    %c1_32 = arith.constant 1 : index
    %c0_33 = arith.constant 0 : index
    %c0_34 = arith.constant 0 : index
    %31 = vector.load %arg8[%c1_32, %c0_33, %c0_34] : memref<10x8x24xbf16, #tpu.memory_space<vmem>>, vector<8x8x24xbf16>
    %32 = vector.shape_cast %31 : vector<8x8x24xbf16> to vector<64x24xbf16>
    %c1_35 = arith.constant 1 : index
    %c0_36 = arith.constant 0 : index
    %c0_37 = arith.constant 0 : index
    %33 = vector.load %arg5[%c1_35, %c0_36, %c0_37] : memref<3x24x8xbf16, #tpu.memory_space<vmem>>, vector<1x24x8xbf16>
    %34 = vector.shape_cast %33 : vector<1x24x8xbf16> to vector<24x8xbf16>
    %cst_38 = arith.constant dense<0.000000e+00> : vector<64x8xf32>
    %35 = tpu.matmul %32, %34, %cst_38 {dimension_numbers = #tpu.dot_dimension_numbers<[1], [0], [0], [1], [0, 0, 1, 1], [], []>} : vector<64x24xbf16>, vector<24x8xbf16>, vector<64x8xf32> -> vector<64x8xf32>
    %36 = arith.addf %30, %35 : vector<64x8xf32>
    %c2 = arith.constant 2 : index
    %c0_39 = arith.constant 0 : index
    %c0_40 = arith.constant 0 : index
    %37 = vector.load %arg8[%c2, %c0_39, %c0_40] : memref<10x8x24xbf16, #tpu.memory_space<vmem>>, vector<8x8x24xbf16>
    %38 = vector.shape_cast %37 : vector<8x8x24xbf16> to vector<64x24xbf16>
    %c2_41 = arith.constant 2 : index
    %c0_42 = arith.constant 0 : index
    %c0_43 = arith.constant 0 : index
    %39 = vector.load %arg5[%c2_41, %c0_42, %c0_43] : memref<3x24x8xbf16, #tpu.memory_space<vmem>>, vector<1x24x8xbf16>
    %40 = vector.shape_cast %39 : vector<1x24x8xbf16> to vector<24x8xbf16>
    %cst_44 = arith.constant dense<0.000000e+00> : vector<64x8xf32>
    %41 = tpu.matmul %38, %40, %cst_44 {dimension_numbers = #tpu.dot_dimension_numbers<[1], [0], [0], [1], [0, 0, 1, 1], [], []>} : vector<64x24xbf16>, vector<24x8xbf16>, vector<64x8xf32> -> vector<64x8xf32>
    %42 = arith.addf %36, %41 : vector<64x8xf32>
    %43 = arith.truncf %42 : vector<64x8xf32> to vector<64x8xbf16>
    %c0_45 = arith.constant 0 : index
    %c0_46 = arith.constant 0 : index
    %c0_47 = arith.constant 0 : index
    %44 = vector.load %arg6[%c0_45, %c0_46, %c0_47] : memref<1x64x8xbf16, #tpu.memory_space<vmem>>, vector<1x64x8xbf16>
    %45 = vector.shape_cast %44 : vector<1x64x8xbf16> to vector<64x8xbf16>
    %46 = vector.shape_cast %43 : vector<64x8xbf16> to vector<1x64x8xbf16>
    tpu.vector_store %arg6[%c0_45, %c0_46, %c0_47], %46 {strides = array<i32>} : memref<1x64x8xbf16, #tpu.memory_space<vmem>>, vector<1x64x8xbf16>,
    %cst_48 = arith.constant dense<0.000000e+00> : vector<8xf32>
    %47 = vector.multi_reduction <add>, %42, %cst_48 [0] : vector<64x8xf32> to vector<8xf32>
    %48 = vector.shape_cast %47 : vector<8xf32> to vector<1x8xf32>
    %cst_49 = arith.constant 6.400000e+01 : f32
    %49 = vector.broadcast %cst_49 : f32 to vector<1x8xf32>
    %50 = arith.divf %48, %49 : vector<1x8xf32>
    %51 = vector.broadcast %50 : vector<1x8xf32> to vector<64x8xf32>
    %52 = arith.subf %42, %51 : vector<64x8xf32>
    %53 = arith.mulf %52, %52 : vector<64x8xf32>
    %cst_50 = arith.constant dense<0.000000e+00> : vector<8xf32>
    %54 = vector.multi_reduction <add>, %53, %cst_50 [0] : vector<64x8xf32> to vector<8xf32>
    %55 = vector.shape_cast %54 : vector<8xf32> to vector<1x8xf32>
    %56 = tpu.concatenate %48, %55 in 1 : vector<1x8xf32>, vector<1x8xf32> -> vector<1x16xf32>
    %c0_51 = arith.constant 0 : index
    %c0_52 = arith.constant 0 : index
    %c0_53 = arith.constant 0 : index
    %c0_54 = arith.constant 0 : index
    %57 = vector.load %arg7[%c0_51, %c0_52, %c0_53, %c0_54] : memref<1x1x1x16xf32, #tpu.memory_space<vmem>>, vector<1x1x1x16xf32>
    %58 = vector.shape_cast %57 : vector<1x1x1x16xf32> to vector<1x16xf32>
    %59 = vector.shape_cast %56 : vector<1x16xf32> to vector<1x1x1x16xf32>
    tpu.vector_store %arg7[%c0_51, %c0_52, %c0_53, %c0_54], %59 {strides = array<i32>} : memref<1x1x1x16xf32, #tpu.memory_space<vmem>>, vector<1x1x1x16xf32>,
    return
  }
  func.func @transform_0(%arg0: i32, %arg1: i32) -> (i32, i32, i32) {
    %c0_i32 = arith.constant 0 : i32
    %c0_i32_0 = arith.constant 0 : i32
    %c0_i32_1 = arith.constant 0 : i32
    return %arg0, %c0_i32, %c0_i32_0 : i32, i32, i32
  }
  func.func @transform_1(%arg0: i32, %arg1: i32) -> (i32, i32) {
    %c0_i32 = arith.constant 0 : i32
    %c0_i32_0 = arith.constant 0 : i32
    %c0_i32_1 = arith.constant 0 : i32
    return %c0_i32, %c0_i32_0 : i32, i32
  }
  func.func @transform_2(%arg0: i32, %arg1: i32) -> (i32, i32) {
    %c0_i32 = arith.constant 0 : i32
    %c0_i32_0 = arith.constant 0 : i32
    %c0_i32_1 = arith.constant 0 : i32
    return %c0_i32, %c0_i32_0 : i32, i32
  }
  func.func @transform_3(%arg0: i32, %arg1: i32) -> (i32, i32, i32) {
    %c0_i32 = arith.constant 0 : i32
    %c0_i32_0 = arith.constant 0 : i32
    %c0_i32_1 = arith.constant 0 : i32
    return %c0_i32, %c0_i32_0, %arg1 : i32, i32, i32
  }
  func.func @transform_4(%arg0: i32, %arg1: i32) -> (i32, i32, i32) {
    %c0_i32 = arith.constant 0 : i32
    %c0_i32_0 = arith.constant 0 : i32
    return %arg0, %c0_i32, %arg1 : i32, i32, i32
  }
  func.func @transform_5(%arg0: i32, %arg1: i32) -> (i32, i32, i32, i32) {
    %c0_i32 = arith.constant 0 : i32
    %c0_i32_0 = arith.constant 0 : i32
    %c0_i32_1 = arith.constant 0 : i32
    return %arg0, %arg1, %c0_i32, %c0_i32_0 : i32, i32, i32, i32
  }
}

</mosaic_0001>

<bundles_post_ra>
// kernel: down_forward.2
= control target key start
LH: loop header
LB: loop body
LE: loop exit
PB: predicated region body
PF: predicated region fallthrough
CT: control target
= control target key end

     0   :  { %s1402_s12 = smov 0   ;;  %s1404_s13 = smov 0   ;;  %s1766_s0 = inlined_call_operand.vmem [shape: bf16[16,2,8,8], index: 0, kind: input, shape index: {}]   ;;  %s1767_s1 = inlined_call_operand.vmem [shape: bf16[3,12,8], index: 1, kind: input, shape index: {}]   ;;  %s1768_s2 = inlined_call_operand.vmem [shape: bf16[2,64,8], index: 2, kind: output, shape index: {0}]   ;;  %s1769_s3 = inlined_call_operand.vmem [shape: f32[2,1,1,16], index: 3, kind: output, shape index: {1}]  }
   0x1   :  { %s1406_s14 = smov 0  }
   0x2 LB: > { %s26_s15 = sadd.s32 1, %s1371_s13  ;;  %p1139_p0 = scmp.ge.s32.totalorder %s1375_s14, 1  ;;  %s1375_s14 = sphi %s1406_s14, %s14_s14   ;;  %s1371_s13 = sphi %s1404_s13, %s1779_s13   ;;  %s1367_s12 = sphi %s1402_s12, %s1778_s12  }
   0x3   : > { %p28_p1 = scmp.ge.s32.totalorder %s26_s15, 2  ;;  %p167_p2 = scmp.lt.s32.totalorder %s1375_s14, 3 }
   0x5   : > { %s1781_s15 = smov (%p28_p1, %s26_s15), 0  ;;  %p168_p3 = pnand %p1139_p0, %p167_p2 }
   0x6   : > { %s1140_s16 = sshll.u32 (!%p168_p3), %s1367_s12, 3  ;;  %s1377_s21 = smov (!%p168_p3), 124  }
   0x7   : > { %171 = sbr.rel (%p168_p3) target bundleno = 633 (0x279), region = 28  ;;  %p206_p4 = scmp.lt.s32.totalorder (!%p168_p3), %s1140_s16, 15 }
   0x8   : > { %s1378_s22 = smov (!%p168_p3), 4   ;;  %s1379_s23 = smov (!%p168_p3), 8  }
   0x9   : > { %p216_p5 = scmp.lt.s32.totalorder (!%p168_p3), %s1367_s12, 1 }
   0xc   : > { %s1783_s16 = smov (!%p206_p4, %s1140_s16), 15  ;;  %vm396_vm0 = vcmask 24576   ;;  %vm397_vm1 = vsmask.f32 256  ;;  %vm423_vm2 = vcmask 93251   ;;  %vm514_vm6 = vcmask 27648  }
   0xd   : > { %s1223_s17 = sshll.u32 %s1783_s16, 3  ;;  %vm424_vm3 = vsmask.f32 7950  ;;  %vm1482_vm4 = vmand %vm396_vm0, %vm397_vm1  ;;  %v399_v33 = vld [vmem:[#allocation2 + $0x4] sm:$0x1]  ;;  %vm573_vm9 = vcmask 60448  }
   0xe   : > { %s210_s20 = scalar_lea.vmem %s1766_s0, %s1223_s17  ;;  %v426_v34 = vld [vmem:[#allocation2 + $0x4] sm:$0x8]  ;;  %v400_v35 = vsel %vm1482_vm4, 0, %v399_v33  ;;  %vm1488_vm5 = vmand %vm423_vm2, %vm424_vm3  ;;  %v405_v39 = vld [vmem:[#allocation2 + $0xc] sm:$0x1]  ;;  %vm391_vm10 = vcmask 93184  }
   0xf   : > { %v1426_v0 = vld [vmem:[%s210_s20 + $0x10] sm:$0xff]   ;;  %v1428_v1 = vld [vmem:[%s210_s20] sm:$0xff]   ;;  %v1434_v6 = vld [vmem:[%s210_s20 + $0x18] sm:$0xff]   ;;  %401 = vst [vmem:[#allocation2 + $0x4] sm:$0x1] %v400_v35  ;;  %v427_v37 = vsel %vm1488_vm5, 0, %v426_v34 }
  0x10   : > { %v1250_v2 = vunpack.c.l.bf16 %v1426_v0  ;;  %v1251_v3 = vunpack.c.h.bf16 %v1426_v0  ;;  %v1242_v4 = vunpack.c.l.bf16 %v1428_v1  ;;  %v1243_v5 = vunpack.c.h.bf16 %v1428_v1  ;;  %v1436_v7 = vld [vmem:[%s210_s20 + $0x8] sm:$0xff]   ;;  %v1275_v8 = vld [vmem:[%s210_s20 + $0x20] sm:$0xff]   ;;  %v1460_v21 = vld [vmem:[%s210_s20 + $0x30] sm:$0xff]   ;;  %428 = vst [vmem:[#allocation2 + $0x4] sm:$0x8] %v427_v37  ;;  %s1785_s12 = smov (!%p216_p5, %s1367_s12), 1 }
  0x11   : > { %v1254_v11 = vunpack.c.l.bf16 %v1434_v6  ;;  %v1255_v12 = vunpack.c.h.bf16 %v1434_v6  ;;  %v1246_v13 = vunpack.c.l.bf16 %v1436_v7  ;;  %v1247_v14 = vunpack.c.h.bf16 %v1436_v7  ;;  %v1450_v17 = vld [vmem:[%s210_s20 + $0x28] sm:$0xff]   ;;  %v1464_v24 = vld [vmem:[%s210_s20 + $0x38] sm:$0xff]   ;;  %v408_v52 = vld [vmem:[#allocation2 + $0x10] sm:$0x1]  ;;  %s1224_s9 = sshll.u32 %s1785_s12, 5  ;;  %s229_s19 = scalar_lea.vmem %s1769_s3, %s1785_s12 }
  0x12   : > { %v1321_v9 = vpack.i.bf16 %v1251_v3, %v1250_v2  ;;  %v1311_v10 = vpack.i.bf16 %v1243_v5, %v1242_v4  ;;  %v1258_v15 = vunpack.c.l.bf16 %v1275_v8  ;;  %v1259_v16 = vunpack.c.h.bf16 %v1275_v8  ;;  %v432_v42 = vld [vmem:[#allocation2 + $0xc] sm:$0x8]  ;;  %v402_v43 = vld [vmem:[#allocation2 + $0x8] sm:$0x1]  ;;  %v429_v47 = vld [vmem:[#allocation2 + $0x8] sm:$0x8]  ;;  %s1695_s16 = scalar_lea.vmem %s1768_s2, %s1224_s9 }
  0x13   : > { %v1326_v19 = vpack.i.bf16 %v1255_v12, %v1254_v11  ;;  %v1316_v20 = vpack.i.bf16 %v1247_v14, %v1246_v13  ;;  %v1262_v22 = vunpack.c.l.bf16 %v1450_v17  ;;  %v1263_v23 = vunpack.c.h.bf16 %v1450_v17  ;;  %v435_v53 = vld [vmem:[#allocation2 + $0x10] sm:$0x8]  ;;  %v411_v54 = vld [vmem:[#allocation2 + $0x14] sm:$0x1]  ;;  %v438_v59 = vld [vmem:[#allocation2 + $0x14] sm:$0x8] }
  0x14   : > { %1322 = vrot.lane.b32.xlu1 %v1321_v9, %s1377_s21  ;;  %1312 = vrot.lane.b32.xlu0 %v1311_v10, %s1377_s21  ;;  %v1331_v18 = vpack.i.bf16 %v1259_v16, %v1258_v15  ;;  %v1266_v25 = vunpack.c.l.bf16 %v1460_v21  ;;  %v1267_v26 = vunpack.c.h.bf16 %v1460_v21  ;;  %v1270_v27 = vunpack.c.l.bf16 %v1464_v24 }
  0x15   : > { %v1271_v28 = vunpack.c.h.bf16 %v1464_v24  ;;  %v1336_v29 = vpack.i.bf16 %v1263_v23, %v1262_v22  ;;  %v403_v46 = vsel %vm1482_vm4, 0, %v402_v43  ;;  %v406_v48 = vsel %vm1482_vm4, 0, %v405_v39 }
  0x16   : > { %1332 = vrot.lane.b32.xlu2 %v1331_v18, %s1377_s21  ;;  %v1341_v30 = vpack.i.bf16 %v1267_v26, %v1266_v25  ;;  %404 = vst [vmem:[#allocation2 + $0x8] sm:$0x1] %v403_v46  ;;  %v430_v49 = vsel %vm1488_vm5, 0, %v429_v47  ;;  %v433_v50 = vsel %vm1488_vm5, 0, %v432_v42  ;;  %v409_v56 = vsel %vm1482_vm4, 0, %v408_v52 }
  0x17   : > { %v1346_v31 = vpack.i.bf16 %v1271_v28, %v1270_v27  ;;  %431 = vst [vmem:[#allocation2 + $0x8] sm:$0x8] %v430_v49  ;;  %v436_v57 = vsel %vm1488_vm5, 0, %v435_v53  ;;  %v412_v58 = vsel %vm1482_vm4, 0, %v411_v54  ;;  %v439_v60 = vsel %vm1488_vm5, 0, %v438_v59 }
  0x18   : > { %407 = vst [vmem:[#allocation2 + $0xc] sm:$0x1] %v406_v48  ;;  %vm515_vm7 = vsmask.f32 7938  ;;  %v441_v42 = vld [vmem:[#allocation2 + $0x18] sm:$0x8] }
  0x19   : > { %434 = vst [vmem:[#allocation2 + $0xc] sm:$0x8] %v433_v50  ;;  %vm1522_vm8 = vmand %vm514_vm6, %vm515_vm7  ;;  %v442_v0 = vsel %vm1488_vm5, 0, %v441_v42  ;;  %vm724_vm11 = vcmask 1045504   ;;  %vm638_vm12 = vcmask 93248   ;;  %vm711_vm15 = vcmask 97280  }
  0x1a   : > { %410 = vst [vmem:[#allocation2 + $0x10] sm:$0x1] %v409_v56  ;;  %vm639_vm13 = vsmask.f32 3328  ;;  %vm923_vm0 = vcmask 60416   ;;  %vm932_vm1 = vcmask 64512  }
  0x1b   : > { %437 = vst [vmem:[#allocation2 + $0x10] sm:$0x8] %v436_v57  ;;  %vm1648_vm14 = vmand %vm638_vm12, %vm639_vm13  ;;  %vm1004_vm3 = vcmask 122880  }
  0x1c   : > { %1327 = vrot.lane.b32.xlu1 %v1326_v19, %s1377_s21  ;;  %1317 = vrot.lane.b32.xlu0 %v1316_v20, %s1377_s21  ;;  %413 = vst [vmem:[#allocation2 + $0x14] sm:$0x1] %v412_v58 }
  0x1d   : > { %440 = vst [vmem:[#allocation2 + $0x14] sm:$0x8] %v439_v60 }
  0x1e   : > { %1337 = vrot.lane.b32.xlu2 %v1336_v29, %s1377_s21  ;;  %443 = vst [vmem:[#allocation2 + $0x18] sm:$0x8] %v442_v0 }
  0x24   : > { %1342 = vrot.lane.b32.xlu0 %v1341_v30, %s1377_s21  ;;  %1347 = vrot.lane.b32.xlu1 %v1346_v31, %s1377_s21  ;;  %v529_v29 = vld [vmem:[#allocation2 + $0x14] sm:$0xf] }
  0x70   : > { %v1333_v38 = vpop.permute.xlu2 %1332 }
  0x71   : > { %v1335_v40 = vunpack.i.h.bf16 %v1333_v38  ;;  %v1334_v41 = vunpack.i.l.bf16 %v1333_v38 }
  0x73   : > { %v336_v44 = vmax.f32 %v1259_v16, %v1335_v40  ;;  %v335_v45 = vmax.f32 %v1258_v15, %v1334_v41  ;;  %v414_v41 = vld [vmem:[#allocation2 + $0x18] sm:$0x1] }
  0x75   : > { %v379_v51 = vmax.f32 %v335_v45, %v336_v44  ;;  %v415_v45 = vsel %vm1482_vm4, 0, %v414_v41 }
  0x76   : > { %416 = vst [vmem:[#allocation2 + $0x18] sm:$0x1] %v415_v45 }
  0x77   : > { %v1502_v55 = vpack.c.bf16 %v379_v51, %v379_v51 }
  0x78   : > { %v1338_v62 = vpop.permute.xlu2 %1337 }
  0x79   : > { %v479_v61 = vshrl.u32 %v1502_v55, 16  ;;  %v482_v8 = vshll.u32 %v1502_v55, 16  ;;  %v1340_v9 = vunpack.i.h.bf16 %v1338_v62  ;;  %v1339_v10 = vunpack.i.l.bf16 %v1338_v62 }
  0x7b   : > { %v481_v63 = vrot.slane %v479_v61, 7  ;;  %v338_v15 = vmax.f32 %v1263_v23, %v1340_v9  ;;  %v337_v16 = vmax.f32 %v1262_v22, %v1339_v10 }
  0x7d   : > { %v484_v18 = vor.u32 %v482_v8, %v481_v63  ;;  %v380_v37 = vmax.f32 %v337_v16, %v338_v15 }
  0x7f   : > { %v530_v23 = vsel %vm1522_vm8, %v484_v18, %v529_v29  ;;  %v1536_v40 = vpack.c.bf16 %v380_v37, %v380_v37  ;;  %v523_v29 = vld [vmem:[#allocation2 + $0xc] sm:$0xf] }
  0x80   : > { %531 = vst [vmem:[#allocation2 + $0x14] sm:$0xf] %v530_v23 }
  0x81   : > { %v486_v49 = vshrl.u32 %v1536_v40, 16 }
  0x86   : > { %v1323_v19 = vpop.permute.xlu1 %1322  ;;  %v1313_v20 = vpop.permute.xlu0 %1312 }
  0x87   : > { %v1325_v30 = vunpack.i.h.bf16 %v1323_v19  ;;  %v1324_v31 = vunpack.i.l.bf16 %v1323_v19  ;;  %v1315_v33 = vunpack.i.h.bf16 %v1313_v20  ;;  %v1314_v34 = vunpack.i.l.bf16 %v1313_v20  ;;  %v517_v20 = vld [vmem:[#allocation2 + $0x4] sm:$0xf] }
  0x89   : > { %v332_v17 = vmax.f32 %v1251_v3, %v1325_v30  ;;  %v331_v22 = vmax.f32 %v1250_v2, %v1324_v31  ;;  %v328_v38 = vmax.f32 %v1243_v5, %v1315_v33  ;;  %v327_v39 = vmax.f32 %v1242_v4, %v1314_v34  ;;  %v417_v2 = vld [vmem:[#allocation2 + $0x1c] sm:$0x1]  ;;  %v444_v3 = vld [vmem:[#allocation2 + $0x1c] sm:$0x8] }
  0x8a   : > { %v418_v4 = vsel %vm1482_vm4, 0, %v417_v2  ;;  %v445_v46 = vsel %vm1488_vm5, 0, %v444_v3 }
  0x8b   : > { %v377_v43 = vmax.f32 %v331_v22, %v332_v17  ;;  %v375_v44 = vmax.f32 %v327_v39, %v328_v38  ;;  %419 = vst [vmem:[#allocation2 + $0x1c] sm:$0x1] %v418_v4 }
  0x8c   : > { %446 = vst [vmem:[#allocation2 + $0x1c] sm:$0x8] %v445_v46 }
  0x8d   : > { %v1542_v5 = vpack.c.bf16 %v377_v43, %v377_v43  ;;  %v383_v1 = vpack.c.bf16 %v375_v44, %v375_v44 }
  0x8e   : > { %v1328_v47 = vpop.permute.xlu1 %1327  ;;  %v1318_v48 = vpop.permute.xlu0 %1317 }
  0x8f   : > { %v1330_v50 = vunpack.i.h.bf16 %v1328_v47  ;;  %v1329_v51 = vunpack.i.l.bf16 %v1328_v47  ;;  %v1320_v52 = vunpack.i.h.bf16 %v1318_v48  ;;  %v1319_v53 = vunpack.i.l.bf16 %v1318_v48  ;;  %553 = vrot.lane.b32.xlu1 %v1542_v5, %s1378_s22  ;;  %549 = vrot.lane.b32.xlu2 %v383_v1, %s1378_s22 }
  0x90   : > { %v451_v54 = vshrl.u32 %v383_v1, 16  ;;  %v454_v56 = vshll.u32 %v383_v1, 16  ;;  %v465_v57 = vshrl.u32 %v1542_v5, 16  ;;  %v468_v58 = vshll.u32 %v1542_v5, 16  ;;  %v520_v1 = vld [vmem:[#allocation2 + $0x8] sm:$0xf] }
  0x91   : > { %v334_v59 = vmax.f32 %v1255_v12, %v1330_v50  ;;  %v333_v60 = vmax.f32 %v1254_v11, %v1329_v51  ;;  %v330_v62 = vmax.f32 %v1247_v14, %v1320_v52  ;;  %v329_v63 = vmax.f32 %v1246_v13, %v1319_v53  ;;  %v526_v51 = vld [vmem:[#allocation2 + $0x10] sm:$0xf] }
  0x92   : > { %v582_v9 = vrot.slane %v451_v54, 4  ;;  %v583_v10 = vrot.slane %v454_v56, 5  ;;  %v453_v15 = vrot.slane %v451_v54, 7  ;;  %v467_v16 = vrot.slane %v465_v57, 7 }
  0x93   : > { %v376_v18 = vmax.f32 %v329_v63, %v330_v62  ;;  %v378_v19 = vmax.f32 %v333_v60, %v334_v59  ;;  %v1566_v11 = vrot.slane %v479_v61, 4  ;;  %v1570_v13 = vrot.slane %v482_v8, 5  ;;  %v532_v59 = vld [vmem:[#allocation2 + $0x18] sm:$0xf]  ;;  %v420_v60 = vld [vmem:[#allocation2 + $0x20] sm:$0x1] }
  0x94   : > { %v584_v30 = vor.u32 %v583_v10, %v582_v9  ;;  %v456_v31 = vor.u32 %v454_v56, %v453_v15  ;;  %v470_v6 = vor.u32 %v468_v58, %v467_v16  ;;  %v488_v14 = vrot.slane %v486_v49, 7  ;;  %v447_v10 = vld [vmem:[#allocation2 + $0x20] sm:$0x8] }
  0x95   : > { %v384_v12 = vpack.c.bf16 %v376_v18, %v376_v18  ;;  %v386_v7 = vpack.c.bf16 %v378_v19, %v378_v19  ;;  %v489_v61 = vshll.u32 %v1536_v40, 16  ;;  %v590_v54 = vrot.slane %v465_v57, 4 }
  0x96   : > { %v585_v33 = vrot.slane %v584_v30, 4  ;;  %v518_v34 = vsel %vm1522_vm8, %v456_v31, %v517_v20  ;;  %v1343_v23 = vpop.permute.xlu0 %1342  ;;  %v1348_v37 = vpop.permute.xlu1 %1347  ;;  %v524_v17 = vsel %vm1522_vm8, %v470_v6, %v523_v29  ;;  %v591_v63 = vrot.slane %v468_v58, 5  ;;  %v535_v6 = vld [vmem:[#allocation2 + $0x1c] sm:$0xf] }
  0x97   : > { %551 = vrot.lane.b32.xlu0 %v384_v12, %s1378_s22  ;;  %555 = vrot.lane.b32.xlu2 %v386_v7, %s1378_s22  ;;  %519 = vst [vmem:[#allocation2 + $0x4] sm:$0xf] %v518_v34  ;;  %v1345_v8 = vunpack.i.h.bf16 %v1343_v23  ;;  %v1344_v22 = vunpack.i.l.bf16 %v1343_v23  ;;  %v458_v38 = vshrl.u32 %v384_v12, 16  ;;  %v461_v39 = vshll.u32 %v384_v12, 16 }
  0x98   : > { %614 = vrot.lane.b32.xlu1 %v585_v33, %s1379_s23  ;;  %v472_v41 = vshrl.u32 %v386_v7, 16  ;;  %v475_v42 = vshll.u32 %v386_v7, 16  ;;  %v1350_v43 = vunpack.i.h.bf16 %v1348_v37  ;;  %v1349_v44 = vunpack.i.l.bf16 %v1348_v37  ;;  %525 = vst [vmem:[#allocation2 + $0xc] sm:$0xf] %v524_v17 }
  0x99   : > { %v340_v45 = vmax.f32 %v1267_v26, %v1345_v8  ;;  %v339_v0 = vmax.f32 %v1266_v25, %v1344_v22  ;;  %v460_v2 = vrot.slane %v458_v38, 7  ;;  %v586_v3 = vrot.slane %v458_v38, 4 }
  0x9a   : > { %v587_v4 = vrot.slane %v461_v39, 5  ;;  %v474_v46 = vrot.slane %v472_v41, 7  ;;  %v594_v47 = vrot.slane %v472_v41, 4  ;;  %v595_v48 = vrot.slane %v475_v42, 5 }
  0x9b   : > { %v463_v50 = vor.u32 %v461_v39, %v460_v2  ;;  %v342_v52 = vmax.f32 %v1271_v28, %v1350_v43  ;;  %v341_v53 = vmax.f32 %v1270_v27, %v1349_v44  ;;  %v381_v25 = vmax.f32 %v339_v0, %v340_v45  ;;  %v1165_v45 = vld [vmem:[%s1767_s1 + $0x8] sm:$0xf]  ;;  %v1234_v0 = vld [vmem:[%s1767_s1 + $0x8] sm:$0x30] }
  0x9c   : > { %v588_v26 = vor.u32 %v587_v4, %v586_v3  ;;  %v477_v56 = vor.u32 %v475_v42, %v474_v46  ;;  %v596_v21 = vor.u32 %v595_v48, %v594_v47  ;;  %v491_v28 = vor.u32 %v489_v61, %v488_v14  ;;  %v1229_v4 = vld [vmem:[%s1767_s1] sm:$0x30]  ;;  %v1215_v47 = vld [vmem:[%s1767_s1 + $0x10] sm:$0xf]  ;;  %v1239_v48 = vld [vmem:[%s1767_s1 + $0x10] sm:$0x30] }
  0x9d   : > { %v521_v62 = vsel %vm1522_vm8, %v463_v50, %v520_v1  ;;  %v382_v9 = vmax.f32 %v341_v53, %v342_v52  ;;  %v389_v15 = vpack.c.bf16 %v381_v25, %v381_v25  ;;  %v421_v58 = vsel %vm1482_vm4, 0, %v420_v60  ;;  %v1189_v1 = vld [vmem:[%s1767_s1] sm:$0xf] }
  0x9e   : > { %v589_v24 = vrot.slane %v588_v26, 4  ;;  %522 = vst [vmem:[#allocation2 + $0x8] sm:$0xf] %v521_v62  ;;  %v527_v27 = vsel %vm1522_vm8, %v477_v56, %v526_v51  ;;  %v597_v57 = vrot.slane %v596_v21, 4  ;;  %v533_v5 = vsel %vm1522_vm8, %v491_v28, %v532_v59 }
  0x9f   : > { %557 = vrot.lane.b32.xlu0 %v1502_v55, %s1378_s22  ;;  %528 = vst [vmem:[#allocation2 + $0x10] sm:$0xf] %v527_v27  ;;  %v390_v16 = vpack.c.bf16 %v382_v9, %v382_v9  ;;  %v600_v18 = vor.u32 %v1570_v13, %v1566_v11  ;;  %v493_v19 = vshrl.u32 %v389_v15, 16  ;;  %v448_v55 = vsel %vm1488_vm5, 0, %v447_v10 }
  0xa0   : > { %616 = vrot.lane.b32.xlu2 %v589_v24, %s1379_s23  ;;  %620 = vrot.lane.b32.xlu1 %v597_v57, %s1379_s23  ;;  %534 = vst [vmem:[#allocation2 + $0x18] sm:$0xf] %v533_v5  ;;  %v592_v20 = vor.u32 %v591_v63, %v590_v54  ;;  %v496_v31 = vshll.u32 %v389_v15, 16  ;;  %v602_v33 = vrot.slane %v486_v49, 4  ;;  %v603_v11 = vrot.slane %v489_v61, 5 }
  0xa1   : > { %422 = vst [vmem:[#allocation2 + $0x20] sm:$0x1] %v421_v58  ;;  %v500_v29 = vshrl.u32 %v390_v16, 16  ;;  %v495_v30 = vrot.slane %v493_v19, 7  ;;  %v503_v32 = vshll.u32 %v390_v16, 16  ;;  %v601_v7 = vrot.slane %v600_v18, 4 }
  0xa2   : > { %449 = vst [vmem:[#allocation2 + $0x20] sm:$0x8] %v448_v55  ;;  %v593_v13 = vrot.slane %v592_v20, 4  ;;  %v604_v23 = vor.u32 %v603_v11, %v602_v33  ;;  %v606_v17 = vrot.slane %v493_v19, 4  ;;  %v607_v8 = vrot.slane %v496_v31, 5 }
  0xa3   : > { %v502_v12 = vrot.slane %v500_v29, 7  ;;  %v498_v14 = vor.u32 %v496_v31, %v495_v30  ;;  %v610_v22 = vrot.slane %v500_v29, 4  ;;  %v611_v38 = vrot.slane %v503_v32, 5 }
  0xa4   : > { %v605_v61 = vrot.slane %v604_v23, 4  ;;  %v608_v39 = vor.u32 %v607_v8, %v606_v17  ;;  %v1380_v44 = vmov 0   ;;  %v1166_v2 = vor.u32 %v1234_v0, %v1165_v45 }
  0xa5   : > { %v536_v36 = vsel %vm1522_vm8, %v498_v14, %v535_v6  ;;  %v505_v34 = vor.u32 %v503_v32, %v502_v12  ;;  %v612_v41 = vor.u32 %v611_v38, %v610_v22  ;;  %392 = vst.msk [vmem:[#allocation2] sm:$0xf] %vm391_vm10, %v1380_v44  ;;  %v1190_v46 = vor.u32 %v1229_v4, %v1189_v1 }
  0xa6   : > { %537 = vst [vmem:[#allocation2 + $0x1c] sm:$0xf] %v536_v36  ;;  %v609_v42 = vrot.slane %v608_v39, 4  ;;  %v726_v3 = vsel %vm724_vm11, %v1166_v2, 0  ;;  %v1216_v50 = vor.u32 %v1239_v48, %v1215_v47 }
  0xa7   : > { %618 = vrot.lane.b32.xlu0 %v593_v13, %s1379_s23  ;;  %v613_v43 = vrot.slane %v612_v41, 4  ;;  %394 = vst.msk [vmem:[#allocation2 + $0x24] sm:$0xf] %vm391_vm10, %v1380_v44  ;;  %735 = vmatpush.bf16.msra.mxu0 %v726_v3  ;;  %v795_v51 = vsel %vm724_vm11, %v1190_v46, 0 }
  0xa8   : > { %622 = vrot.lane.b32.xlu2 %v601_v7, %s1379_s23  ;;  %561 = vrot.lane.b32.xlu1 %v389_v15, %s1378_s22  ;;  %v876_v53 = vsel %vm724_vm11, %v1216_v50, 0 }
  0xa9   : > { %v538_v37 = vld [vmem:[#allocation2 + $0x20] sm:$0xf]  ;;  %1279 = vmatpush.bf16.msra.mxu3 %v726_v3  ;;  %1280 = vmatpush.bf16.msra.mxu1 %v795_v51 }
  0xaa   : > { %v539_v49 = vsel %vm1522_vm8, %v505_v34, %v538_v37  ;;  %1281 = vmatpush.bf16.msra.mxu2 %v876_v53 }
  0xab   : > { %540 = vst [vmem:[#allocation2 + $0x20] sm:$0xf] %v539_v49  ;;  %804 = vmatpush.bf16.msrb.mxu0 %v795_v51 }
  0xaf   : > { %559 = vrot.lane.b32.xlu0 %v1536_v40, %s1378_s22 }
  0xb0   : > { %563 = vrot.lane.b32.xlu1 %v390_v16, %s1378_s22  ;;  %624 = vrot.lane.b32.xlu2 %v605_v61, %s1379_s23 }
  0xb7   : > { %626 = vrot.lane.b32.xlu0 %v609_v42, %s1379_s23 }
  0xb8   : > { %628 = vrot.lane.b32.xlu2 %v613_v43, %s1379_s23 }
  0xe9   : > { %v550_v35 = vpop.permute.xlu2 %549 }
  0xea   : > { %574 = vst.msk [vmem:[#allocation2 + $0x4] sm:$0xf] %vm573_vm9, %v550_v35 }
  0xf1   : > { %v556_v40 = vpop.permute.xlu2 %555  ;;  %v641_v21 = vld [vmem:[#allocation2 + $0x4] sm:$0xf] }
  0xf2   : > { %577 = vst.msk [vmem:[#allocation2 + $0x10] sm:$0xf] %vm573_vm9, %v556_v40 }
  0xf9   : > { %v650_v9 = vld [vmem:[#allocation2 + $0x10] sm:$0xf] }
  0xfa   : > { %v617_v59 = vpop.permute.xlu2 %616 }
 0x101   : > { %v554_v52 = vpop.permute.xlu1 %553 }
 0x102   : > { %576 = vst.msk [vmem:[#allocation2 + $0xc] sm:$0xf] %vm573_vm9, %v554_v52  ;;  %v623_v24 = vpop.permute.xlu2 %622 }
 0x109   : > { %v552_v26 = vpop.permute.xlu0 %551  ;;  %v647_v57 = vld [vmem:[#allocation2 + $0xc] sm:$0xf] }
 0x10a   : > { %575 = vst.msk [vmem:[#allocation2 + $0x8] sm:$0xf] %vm573_vm9, %v552_v26  ;;  %v615_v56 = vpop.permute.xlu1 %614  ;;  %v625_v55 = vpop.permute.xlu2 %624 }
 0x10b   : > { %v642_v25 = vsel %vm1648_vm14, %v615_v56, %v641_v21 }
 0x10c   : > { %643 = vst [vmem:[#allocation2 + $0x4] sm:$0xf] %v642_v25 }
 0x111   : > { %v644_v60 = vld [vmem:[#allocation2 + $0x8] sm:$0xf]  ;;  %v558_v62 = vpop.permute.xlu0 %557 }
 0x112   : > { %v645_v63 = vsel %vm1648_vm14, %v617_v59, %v644_v60  ;;  %578 = vst.msk [vmem:[#allocation2 + $0x14] sm:$0xf] %vm573_vm9, %v558_v62  ;;  %v621_v28 = vpop.permute.xlu1 %620  ;;  %v629_v14 = vpop.permute.xlu2 %628 }
 0x113   : > { %646 = vst [vmem:[#allocation2 + $0x8] sm:$0xf] %v645_v63  ;;  %v651_v10 = vsel %vm1648_vm14, %v621_v28, %v650_v9  ;;  %v1225_v13 = vld [vmem:[#allocation2] sm:$0xff] }
 0x114   : > { %652 = vst [vmem:[#allocation2 + $0x10] sm:$0xf] %v651_v10 }
 0x119   : > { %v653_v27 = vld [vmem:[#allocation2 + $0x14] sm:$0xf]  ;;  %v619_v15 = vpop.permute.xlu0 %618 }
 0x11a   : > { %v654_v16 = vsel %vm1648_vm14, %v623_v24, %v653_v27  ;;  %v648_v5 = vsel %vm1648_vm14, %v619_v15, %v647_v57  ;;  %v562_v58 = vpop.permute.xlu1 %561  ;;  %v1230_v18 = vld [vmem:[#allocation2 + $0x4] sm:$0xff] }
 0x11b   : > { %655 = vst [vmem:[#allocation2 + $0x14] sm:$0xf] %v654_v16  ;;  %1167 = vmatmul.msk.bf16.vlgmr.msra.gmra.mxu0 %vm711_vm15, %v1230_v18 }
 0x11c   : > { %649 = vst [vmem:[#allocation2 + $0xc] sm:$0xf] %v648_v5  ;;  %885 = vmatpush.bf16.msra.mxu0 %v876_v53 }
 0x11d   : > { %580 = vst.msk [vmem:[#allocation2 + $0x1c] sm:$0xf] %vm573_vm9, %v562_v58 }
 0x121   : > { %v560_v19 = vpop.permute.xlu0 %559 }
 0x122   : > { %579 = vst.msk [vmem:[#allocation2 + $0x18] sm:$0xf] %vm573_vm9, %v560_v19  ;;  %v564_v20 = vpop.permute.xlu1 %563  ;;  %v1236_v29 = vld [vmem:[#allocation2 + $0x10] sm:$0xff] }
 0x123   : > { %581 = vst.msk [vmem:[#allocation2 + $0x20] sm:$0xf] %vm573_vm9, %v564_v20  ;;  %v1231_v30 = vld [vmem:[#allocation2 + $0xc] sm:$0xff]  ;;  %1218 = vmatmul.msk.bf16.vlgmr.msra.gmra.mxu2 %vm711_vm15, %v1236_v29  ;;  %v1381_v20 = vmov 64.0  }
 0x124   : > { %v1226_v31 = vld [vmem:[#allocation2 + $0x8] sm:$0xff]  ;;  %1168 = vmatmul.msk.bf16.vlgmr.msra.gmra.mxu3 %vm711_vm15, %v1231_v30  ;;  %v659_v32 = vld [vmem:[#allocation2 + $0x1c] sm:$0xf]  ;;  %v1227_v23 = vld [vmem:[#allocation2 + $0x10] sm:$0xff]  ;;  %1351 = vrcp.f32 %v1381_v20 }
 0x125   : > { %1192 = vmatmul.msk.bf16.vlgmr.msra.gmra.mxu1 %vm711_vm15, %v1226_v31  ;;  %v1235_v49 = vld [vmem:[#allocation2 + $0x8] sm:$0xff] }
 0x129   : > { %v656_v6 = vld [vmem:[#allocation2 + $0x18] sm:$0xf]  ;;  %v627_v12 = vpop.permute.xlu0 %626 }
 0x12a   : > { %v657_v7 = vsel %vm1648_vm14, %v625_v55, %v656_v6  ;;  %v662_v33 = vld [vmem:[#allocation2 + $0x20] sm:$0xf]  ;;  %v660_v11 = vsel %vm1648_vm14, %v627_v12, %v659_v32 }
 0x12b   : > { %658 = vst [vmem:[#allocation2 + $0x18] sm:$0xf] %v657_v7  ;;  %v663_v36 = vsel %vm1648_vm14, %v629_v14, %v662_v33  ;;  %1191 = vmatmul.msk.bf16.vlgmr.msrb.gmra.mxu0 %vm711_vm15, %v1225_v13  ;;  %v1352_v14 = vpop.eup %1351 }
 0x12c   : > { %664 = vst [vmem:[#allocation2 + $0x20] sm:$0xf] %v663_v36  ;;  %vm959_vm2 = vweird.f32 %v1352_v14 }
 0x12d   : > { %661 = vst [vmem:[#allocation2 + $0x1c] sm:$0xf] %v660_v11 }
 0x132   : > { %v1232_v34 = vld [vmem:[#allocation2 + $0x14] sm:$0xff] }
 0x133   : > { %v1238_v61 = vld [vmem:[#allocation2 + $0x20] sm:$0xff] }
 0x134   : > { %v1237_v37 = vld [vmem:[#allocation2 + $0x18] sm:$0xff]  ;;  %1169 = vmatmul.msk.bf16.gmra.mxu3 %vm711_vm15, %v1232_v34 }
 0x135   : > { %1193 = vmatmul.msk.bf16.gmra.mxu1 %vm711_vm15, %v1227_v23  ;;  %1219 = vmatmul.msk.bf16.gmra.mxu2 %vm711_vm15, %v1237_v37  ;;  %v1233_v17 = vld [vmem:[#allocation2 + $0x1c] sm:$0xff]  ;;  %v955_v23 = vmul.f32 64.0, %v1352_v14 }
 0x136   : > { %v1228_v8 = vld [vmem:[#allocation2 + $0x18] sm:$0xff] }
 0x13b   : > { %1217 = vmatmul.msk.bf16.vlgmr.msra.gmra.mxu0 %vm711_vm15, %v1235_v49 }
 0x144   : > { %1170 = vmatmul.msk.bf16.gmra.mxu3 %vm711_vm15, %v1233_v17 }
 0x145   : > { %1194 = vmatmul.msk.bf16.gmra.mxu1 %vm711_vm15, %v1228_v8  ;;  %1220 = vmatmul.msk.bf16.gmra.mxu2 %vm711_vm15, %v1238_v61 }
 0x198   : > { %v737_v22 = vpop.f32.mrf.mxu0 }
 0x1a0   : > { %v739_v38 = vpop.f32.mrf.mxu0 }
 0x1a2   : > { %v811_v39 = vpop.f32.mrf.mxu1 }
 0x1a6   : > { %v892_v41 = vpop.f32.mrf.mxu2 }
 0x1a7   : > { %v742_v42 = vpop.f32.mrf.mxu3 }
 0x1a8   : > { %v812_v43 = vadd.f32 %v811_v39, %v742_v42  ;;  %v806_v35 = vpop.f32.mrf.mxu0 }
 0x1a9   : > { %v807_v48 = vadd.f32 %v806_v35, %v737_v22 }
 0x1aa   : > { %v813_v44 = vpop.f32.mrf.mxu1  ;;  %v1690_v40 = vadd.f32 %v892_v41, %v812_v43 }
 0x1ac   : > { %v917_v45 = vpack.c.bf16 %v1690_v40, %v1690_v40  ;;  %v936_v5 = vsel %vm932_vm1, %v1690_v40, 0.0 }
 0x1ae   : > { %v894_v0 = vpop.f32.mrf.mxu2  ;;  %926 = vst.msk [vmem:[%s1695_s16 + $0x8] sm:$0xf] %vm923_vm0, %v917_v45 }
 0x1af   : > { %v744_v2 = vpop.f32.mrf.mxu3 }
 0x1b0   : > { %v814_v3 = vadd.f32 %v813_v44, %v744_v2  ;;  %v808_v1 = vpop.f32.mrf.mxu0 }
 0x1b1   : > { %v809_v59 = vadd.f32 %v808_v1, %v739_v38  ;;  %v956_v38 = vsub.f32 1.0, %v955_v23 }
 0x1b2   : > { %v816_v4 = vpop.f32.mrf.mxu1  ;;  %v1701_v46 = vadd.f32 %v894_v0, %v814_v3 }
 0x1b3   : > { %v957_v42 = vmul.f32 %v1352_v14, %v956_v38 }
 0x1b4   : > { %v918_v47 = vpack.c.bf16 %v1701_v46, %v1701_v46  ;;  %v938_v19 = vsel %vm932_vm1, %v1701_v46, 0.0 }
 0x1b5   : > { %v958_v44 = vadd.f32 %v1352_v14, %v957_v42 }
 0x1b6   : > { %927 = vst.msk [vmem:[%s1695_s16 + $0xc] sm:$0xf] %vm923_vm0, %v918_v47 }
 0x1b7   : > { %v747_v50 = vpop.f32.mrf.mxu3  ;;  %v960_v2 = vsel %vm959_vm2, %v1352_v14, %v958_v44 }
 0x1b8   : > { %v817_v51 = vadd.f32 %v816_v4, %v747_v50  ;;  %v897_v52 = vpop.f32.mrf.mxu2  ;;  %v887_v53 = vpop.f32.mrf.mxu0 }
 0x1b9   : > { %v1707_v54 = vadd.f32 %v887_v53, %v807_v48 }
 0x1ba   : > { %v1709_v26 = vadd.f32 %v897_v52, %v817_v51  ;;  %v818_v56 = vpop.f32.mrf.mxu1 }
 0x1bb   : > { %v915_v21 = vpack.c.bf16 %v1707_v54, %v1707_v54  ;;  %v933_v24 = vsel %vm932_vm1, %v1707_v54, 0.0 }
 0x1bc   : > { %v919_v25 = vpack.c.bf16 %v1709_v26, %v1709_v26  ;;  %v940_v32 = vsel %vm932_vm1, %v1709_v26, 0.0 }
 0x1bd   : > { %924 = vst.msk [vmem:[%s1695_s16] sm:$0xf] %vm923_vm0, %v915_v21 }
 0x1be   : > { %928 = vst.msk [vmem:[%s1695_s16 + $0x10] sm:$0xf] %vm923_vm0, %v919_v25 }
 0x1bf   : > { %v749_v60 = vpop.f32.mrf.mxu3 }
 0x1c0   : > { %v819_v62 = vadd.f32 %v818_v56, %v749_v60  ;;  %v899_v63 = vpop.f32.mrf.mxu2  ;;  %v889_v9 = vpop.f32.mrf.mxu0 }
 0x1c1   : > { %v908_v28 = vadd.f32 %v889_v9, %v809_v59 }
 0x1c2   : > { %v912_v10 = vadd.f32 %v899_v63, %v819_v62  ;;  %v821_v58 = vpop.f32.mrf.mxu1 }
 0x1c3   : > { %v916_v27 = vpack.c.bf16 %v908_v28, %v908_v28  ;;  %v934_v57 = vsel %vm932_vm1, %v908_v28, 0.0 }
 0x1c4   : > { %v920_v15 = vpack.c.bf16 %v912_v10, %v912_v10  ;;  %v935_v16 = vadd.f32 %v934_v57, %v933_v24  ;;  %v942_v33 = vsel %vm932_vm1, %v912_v10, 0.0 }
 0x1c5   : > { %925 = vst.msk [vmem:[%s1695_s16 + $0x4] sm:$0xf] %vm923_vm0, %v916_v27 }
 0x1c6   : > { %v937_v18 = vadd.f32 %v936_v5, %v935_v16  ;;  %929 = vst.msk [vmem:[%s1695_s16 + $0x14] sm:$0xf] %vm923_vm0, %v920_v15 }
 0x1c7   : > { %v752_v55 = vpop.f32.mrf.mxu3 }
 0x1c8   : > { %v939_v29 = vadd.f32 %v938_v19, %v937_v18  ;;  %v822_v30 = vadd.f32 %v821_v58, %v752_v55  ;;  %v902_v31 = vpop.f32.mrf.mxu2 }
 0x1ca   : > { %v913_v6 = vadd.f32 %v902_v31, %v822_v30  ;;  %v941_v12 = vadd.f32 %v940_v32, %v939_v29  ;;  %v823_v13 = vpop.f32.mrf.mxu1 }
 0x1cc   : > { %v921_v7 = vpack.c.bf16 %v913_v6, %v913_v6  ;;  %v943_v11 = vadd.f32 %v942_v33, %v941_v12  ;;  %v944_v49 = vsel %vm932_vm1, %v913_v6, 0.0 }
 0x1ce   : > { %930 = vst.msk [vmem:[%s1695_s16 + $0x18] sm:$0xf] %vm923_vm0, %v921_v7  ;;  %v945_v8 = vadd.f32 %v944_v49, %v943_v11 }
 0x1cf   : > { %v754_v36 = vpop.f32.mrf.mxu3 }
 0x1d0   : > { %v824_v34 = vadd.f32 %v823_v13, %v754_v36  ;;  %v904_v37 = vpop.f32.mrf.mxu2 }
 0x1d2   : > { %v914_v17 = vadd.f32 %v904_v37, %v824_v34 }
 0x1d4   : > { %v922_v61 = vpack.c.bf16 %v914_v17, %v914_v17  ;;  %v946_v22 = vsel %vm932_vm1, %v914_v17, 0.0 }
 0x1d5   : > { %v947_v39 = vadd.f32 %v946_v22, %v945_v8 }
 0x1d6   : > { %931 = vst.msk [vmem:[%s1695_s16 + $0x1c] sm:$0xf] %vm923_vm0, %v922_v61 }
 0x1d7   : > { %v948_v41 = vrot.slane %v947_v39, 4 }
 0x1d9   : > { %v949_v43 = vadd.f32 %v948_v41, %v947_v39 }
 0x1db   : > { %v950_v35 = vrot.slane %v949_v43, 2 }
 0x1dd   : > { %v951_v45 = vadd.f32 %v950_v35, %v949_v43 }
 0x1df   : > { %v952_v0 = vrot.slane %v951_v45, 1 }
 0x1e1   : > { %v953_v3 = vadd.f32 %v952_v0, %v951_v45 }
 0x1e3   : > { %v961_v1 = vmul.f32 %v960_v2, %v953_v3 }
 0x1e5   : > { %v962_v4 = vsub.f32 %v1707_v54, %v961_v1  ;;  %v963_v47 = vsub.f32 %v908_v28, %v961_v1  ;;  %v964_v48 = vsub.f32 %v1690_v40, %v961_v1  ;;  %v965_v50 = vsub.f32 %v1701_v46, %v961_v1 }
 0x1e6   : > { %v966_v51 = vsub.f32 %v1709_v26, %v961_v1  ;;  %v967_v21 = vsub.f32 %v912_v10, %v961_v1  ;;  %v968_v63 = vsub.f32 %v913_v6, %v961_v1  ;;  %v969_v40 = vsub.f32 %v914_v17, %v961_v1 }
 0x1e7   : > { %v970_v52 = vmul.f32 %v962_v4, %v962_v4  ;;  %v971_v53 = vmul.f32 %v963_v47, %v963_v47  ;;  %v972_v56 = vmul.f32 %v964_v48, %v964_v48  ;;  %v973_v25 = vmul.f32 %v965_v50, %v965_v50 }
 0x1e8   : > { %v974_v9 = vmul.f32 %v966_v51, %v966_v51  ;;  %v975_v24 = vmul.f32 %v967_v21, %v967_v21  ;;  %v976_v27 = vmul.f32 %v968_v63, %v968_v63  ;;  %v977_v15 = vmul.f32 %v969_v40, %v969_v40 }
 0x1e9   : > { %v978_v59 = vsel %vm932_vm1, %v970_v52, 0.0  ;;  %v979_v60 = vsel %vm932_vm1, %v971_v53, 0.0  ;;  %v981_v54 = vsel %vm932_vm1, %v972_v56, 0.0  ;;  %v983_v46 = vsel %vm932_vm1, %v973_v25, 0.0 }
 0x1ea   : > { %v980_v62 = vadd.f32 %v979_v60, %v978_v59  ;;  %v985_v57 = vsel %vm932_vm1, %v974_v9, 0.0  ;;  %v987_v16 = vsel %vm932_vm1, %v975_v24, 0.0  ;;  %v989_v58 = vsel %vm932_vm1, %v976_v27, 0.0 }
 0x1eb   : > { %v991_v19 = vsel %vm932_vm1, %v977_v15, 0.0 }
 0x1ec   : > { %v982_v28 = vadd.f32 %v981_v54, %v980_v62 }
 0x1ee   : > { %v984_v26 = vadd.f32 %v983_v46, %v982_v28 }
 0x1f0   : > { %v986_v10 = vadd.f32 %v985_v57, %v984_v26 }
 0x1f2   : > { %v988_v5 = vadd.f32 %v987_v16, %v986_v10 }
 0x1f4   : > { %v990_v18 = vadd.f32 %v989_v58, %v988_v5 }
 0x1f6   : > { %v992_v55 = vadd.f32 %v991_v19, %v990_v18 }
 0x1f8   : > { %v993_v20 = vrot.slane %v992_v55, 4 }
 0x1fa   : > { %v994_v29 = vadd.f32 %v993_v20, %v992_v55 }
 0x1fc   : > { %v995_v30 = vrot.slane %v994_v29, 2 }
 0x1fe   : > { %v996_v31 = vadd.f32 %v995_v30, %v994_v29 }
 0x200   : > { %v997_v32 = vrot.slane %v996_v31, 1 }
 0x202   : > { %v998_v6 = vadd.f32 %v997_v32, %v996_v31 }
 0x204   : > { %1000 = vrot.lane.b32.xlu0 %v998_v6, %s1379_s23 }
 0x276   : > { %v1001_v12 = vpop.permute.xlu0 %1000 }
 0x277   : > { %v1003_v7 = vsel %vm932_vm1, %v953_v3, %v1001_v12 }
 0x278   : > { %1005 = vst.msk [vmem:[%s229_s19] sm:$0x1] %vm1004_vm3, %v1003_v7 }
 0x279 PF: > { %s14_s14 = sadd.s32 1, %s1375_s14   ;;  %s1778_s12 = smov %s1371_s13 }
 0x27a   : > { %p11_p6 = scmp.ge.s32.totalorder %s14_s14, 4   ;;  %s1779_s13 = smov %s1781_s15 }
 0x27c   :  { %13 = sbr.rel (!%p11_p6) target bundleno = 2 (0x2), region = 78 }

// kernel: down_forward.3
= control target key start
LH: loop header
LB: loop body
LE: loop exit
PB: predicated region body
PF: predicated region fallthrough
CT: control target
= control target key end

     0   :  { %s1316_s18 = smov 0   ;;  %s1318_s19 = smov 0   ;;  %s1624_s0 = inlined_call_operand.vmem [shape: bf16[2,64,8], index: 0, kind: input, shape index: {}]   ;;  %s1625_s1 = inlined_call_operand.vmem [shape: f32[1,8], index: 1, kind: input, shape index: {}]   ;;  %s1626_s2 = inlined_call_operand.vmem [shape: f32[1,8], index: 2, kind: input, shape index: {}]   ;;  %s1627_s3 = inlined_call_operand.vmem [shape: bf16[3,24,8], index: 3, kind: input, shape index: {}]   ;;  %s1628_s4 = inlined_call_operand.vmem [shape: bf16[2,64,8], index: 4, kind: output, shape index: {0}]   ;;  %s1629_s5 = inlined_call_operand.vmem [shape: f32[2,1,1,16], index: 5, kind: output, shape index: {1}]  }
   0x1   :  { %s1320_s20 = smov 0  }
   0x2 LB: > { %s28_s21 = sadd.s32 1, %s1276_s19  ;;  %p1099_p0 = scmp.ge.s32.totalorder %s1280_s20, 1  ;;  %s1280_s20 = sphi %s1320_s20, %s16_s20   ;;  %s1276_s19 = sphi %s1318_s19, %s1639_s19   ;;  %s1272_s18 = sphi %s1316_s18, %s1638_s18  }
   0x3   : > { %p30_p1 = scmp.ge.s32.totalorder %s28_s21, 2  ;;  %p215_p2 = scmp.lt.s32.totalorder %s1280_s20, 3 }
   0x5   : > { %s1641_s21 = smov (%p30_p1, %s28_s21), 0  ;;  %p216_p3 = pnand %p1099_p0, %p215_p2 }
   0x6   : > { %p256_p4 = scmp.lt.s32.totalorder (!%p216_p3), %s1272_s18, 1  ;;  %s1282_s30 = smov (!%p216_p3), 8  }
   0x7   : > { %219 = sbr.rel (%p216_p3) target bundleno = 514 (0x202), region = 36  ;;  %s1283_s6 = smov (!%p216_p3), 16  }
   0xc   : > { %vm341_vm0 = vcmask 57344   ;;  %vm368_vm1 = vcmask 191619   ;;  %s1643_s18 = smov (!%p256_p4, %s1272_s18), 1  ;;  %vm342_vm2 = vsmask.f32 256  ;;  %vm459_vm6 = vcmask 60416  }
   0xd   : > { %v350_v0 = vld [vmem:[#allocation2 + $0xc] sm:$0x1]  ;;  %vm1336_vm3 = vmand %vm341_vm0, %vm342_vm2  ;;  %vm369_vm4 = vsmask.f32 7950  ;;  %v377_v2 = vld [vmem:[#allocation2 + $0xc] sm:$0x8]  ;;  %s278_s28 = scalar_lea.vmem %s1629_s5, %s1643_s18 }
   0xe   : > { %s1184_s22 = sshll.u32 %s1643_s18, 5  ;;  %v1344_v3 = vld [vmem:[%s1625_s1] ss:$0 sm:$0xff]  ;;  %v351_v4 = vsel %vm1336_vm3, 0, %v350_v0  ;;  %vm1348_vm5 = vmand %vm368_vm1, %vm369_vm4  ;;  %v347_v6 = vld [vmem:[#allocation2 + $0x8] sm:$0x1] }
   0xf   : > { %s1357_s27 = scalar_lea.vmem %s1624_s0, %s1184_s22  ;;  %352 = vst [vmem:[#allocation2 + $0xc] sm:$0x1] %v351_v4  ;;  %v378_v7 = vsel %vm1348_vm5, 0, %v377_v2  ;;  %v348_v8 = vsel %vm1336_vm3, 0, %v347_v6  ;;  %v374_v9 = vld [vmem:[#allocation2 + $0x8] sm:$0x8]  ;;  %s1559_s26 = scalar_lea.vmem %s1628_s4, %s1184_s22 }
  0x10   : > { %v1217_v10 = vld [vmem:[%s1357_s27 + $0x8] sm:$0xff]   ;;  %v1202_v11 = vld [vmem:[%s1357_s27] sm:$0xff]   ;;  %379 = vst [vmem:[#allocation2 + $0xc] sm:$0x8] %v378_v7  ;;  %v375_v12 = vsel %vm1348_vm5, 0, %v374_v9  ;;  %v1218_v18 = vld [vmem:[%s1357_s27 + $0x10] sm:$0xff]  }
  0x11   : > { %v1207_v13 = vunpack.c.l.bf16 %v1217_v10  ;;  %v1370_v14 = vld [vmem:[%s1626_s2] ss:$0 sm:$0xff]  ;;  %v1203_v15 = vunpack.c.l.bf16 %v1202_v11  ;;  %v1208_v16 = vunpack.c.h.bf16 %v1217_v10  ;;  %v1204_v17 = vunpack.c.h.bf16 %v1202_v11  ;;  %349 = vst [vmem:[#allocation2 + $0x8] sm:$0x1] %v348_v8  ;;  %v356_v25 = vld [vmem:[#allocation2 + $0x14] sm:$0x1] }
  0x12   : > { %376 = vst [vmem:[#allocation2 + $0x8] sm:$0x8] %v375_v12  ;;  %v1211_v19 = vunpack.c.l.bf16 %v1218_v18  ;;  %v1212_v20 = vunpack.c.h.bf16 %v1218_v18  ;;  %v383_v26 = vld [vmem:[#allocation2 + $0x14] sm:$0x8]  ;;  %v359_v27 = vld [vmem:[#allocation2 + $0x18] sm:$0x1] }
  0x13   : > { %v302_v21 = vmul.f32 %v1344_v3, %v1207_v13  ;;  %v300_v22 = vmul.f32 %v1344_v3, %v1203_v15  ;;  %v303_v23 = vmul.f32 %v1344_v3, %v1208_v16  ;;  %v301_v24 = vmul.f32 %v1344_v3, %v1204_v17  ;;  %v386_v32 = vld [vmem:[#allocation2 + $0x18] sm:$0x8] }
  0x14   : > { %v304_v28 = vmul.f32 %v1344_v3, %v1211_v19  ;;  %v305_v29 = vmul.f32 %v1344_v3, %v1212_v20  ;;  %v357_v30 = vsel %vm1336_vm3, 0, %v356_v25  ;;  %v384_v31 = vsel %vm1348_vm5, 0, %v383_v26  ;;  %v1219_v33 = vld [vmem:[%s1357_s27 + $0x18] sm:$0xff]   ;;  %v344_v20 = vld [vmem:[#allocation2 + $0x4] sm:$0x1] }
  0x15   : > { %v314_v34 = vadd.f32 %v1370_v14, %v302_v21  ;;  %v312_v35 = vadd.f32 %v1370_v14, %v300_v22  ;;  %v315_v36 = vadd.f32 %v1370_v14, %v303_v23  ;;  %v313_v37 = vadd.f32 %v1370_v14, %v301_v24  ;;  %358 = vst [vmem:[#allocation2 + $0x14] sm:$0x1] %v357_v30  ;;  %v371_v21 = vld [vmem:[#allocation2 + $0x4] sm:$0x8] }
  0x16   : > { %v316_v38 = vadd.f32 %v1370_v14, %v304_v28  ;;  %v317_v39 = vadd.f32 %v1370_v14, %v305_v29  ;;  %385 = vst [vmem:[#allocation2 + $0x14] sm:$0x8] %v384_v31  ;;  %v360_v40 = vsel %vm1336_vm3, 0, %v359_v27  ;;  %v387_v41 = vsel %vm1348_vm5, 0, %v386_v32  ;;  %v362_v28 = vld [vmem:[#allocation2 + $0x1c] sm:$0x1] }
  0x17   : > { %v322_v42 = vmax.f32 %v314_v34, 0.0  ;;  %v320_v43 = vmax.f32 %v312_v35, 0.0  ;;  %v321_v44 = vmax.f32 %v313_v37, 0.0  ;;  %361 = vst [vmem:[#allocation2 + $0x18] sm:$0x1] %v360_v40  ;;  %v1215_v47 = vunpack.c.l.bf16 %v1219_v33 }
  0x18   : > { %v324_v45 = vmax.f32 %v316_v38, 0.0  ;;  %v325_v46 = vmax.f32 %v317_v39, 0.0  ;;  %v1216_v48 = vunpack.c.h.bf16 %v1219_v33  ;;  %v323_v51 = vmax.f32 %v315_v36, 0.0  ;;  %388 = vst [vmem:[#allocation2 + $0x18] sm:$0x8] %v387_v41 }
  0x19   : > { %v330_v49 = vpack.c.bf16 %v322_v42, %v322_v42  ;;  %v1394_v50 = vpack.c.bf16 %v320_v43, %v320_v43  ;;  %v329_v52 = vpack.c.bf16 %v321_v44, %v321_v44  ;;  %vm460_vm7 = vsmask.f32 7938  ;;  %v468_v63 = vld [vmem:[#allocation2 + $0xc] sm:$0xf]  ;;  %v465_v8 = vld [vmem:[#allocation2 + $0x8] sm:$0xf] }
  0x1a   : > { %v332_v53 = vpack.c.bf16 %v324_v45, %v324_v45  ;;  %v1396_v54 = vpack.c.bf16 %v325_v46, %v325_v46  ;;  %v306_v60 = vmul.f32 %v1344_v3, %v1215_v47  ;;  %v307_v61 = vmul.f32 %v1344_v3, %v1216_v48  ;;  %vm1409_vm8 = vmand %vm459_vm6, %vm460_vm7  ;;  %v389_v31 = vld [vmem:[#allocation2 + $0x1c] sm:$0x8]  ;;  %v365_v33 = vld [vmem:[#allocation2 + $0x20] sm:$0x1] }
  0x1b   : > { %498 = vrot.lane.b32.xlu1 %v330_v49, %s1282_s30  ;;  %494 = vrot.lane.b32.xlu0 %v1394_v50, %s1282_s30  ;;  %v410_v55 = vshrl.u32 %v330_v49, 16  ;;  %v413_v56 = vshll.u32 %v330_v49, 16  ;;  %v403_v57 = vshrl.u32 %v329_v52, 16  ;;  %v406_v58 = vshll.u32 %v329_v52, 16  ;;  %v392_v38 = vld [vmem:[#allocation2 + $0x20] sm:$0x8] }
  0x1c   : > { %502 = vrot.lane.b32.xlu2 %v332_v53, %s1282_s30  ;;  %v424_v59 = vshrl.u32 %v332_v53, 16  ;;  %v1404_v62 = vpack.c.bf16 %v323_v51, %v323_v51  ;;  %v427_v4 = vshll.u32 %v332_v53, 16  ;;  %v431_v10 = vshrl.u32 %v1396_v54, 16  ;;  %v353_v44 = vld [vmem:[#allocation2 + $0x10] sm:$0x1] }
  0x1d   : > { %v412_v0 = vrot.slane %v410_v55, 7  ;;  %v405_v2 = vrot.slane %v403_v57, 7  ;;  %v535_v6 = vrot.slane %v410_v55, 4  ;;  %v536_v7 = vrot.slane %v413_v56, 5  ;;  %v474_v16 = vld [vmem:[#allocation2 + $0x14] sm:$0xf] }
  0x1e   : > { %v426_v9 = vrot.slane %v424_v59, 7  ;;  %v531_v13 = vrot.slane %v403_v57, 4  ;;  %v532_v15 = vrot.slane %v406_v58, 5  ;;  %v433_v18 = vrot.slane %v431_v10, 7 }
  0x1f   : > { %v415_v11 = vor.u32 %v413_v56, %v412_v0  ;;  %v408_v12 = vor.u32 %v406_v58, %v405_v2  ;;  %v434_v19 = vshll.u32 %v1396_v54, 16  ;;  %v318_v22 = vadd.f32 %v1370_v14, %v306_v60  ;;  %v477_v27 = vld [vmem:[#allocation2 + $0x18] sm:$0xf]  ;;  %v380_v58 = vld [vmem:[#allocation2 + $0x10] sm:$0x8] }
  0x20   : > { %v429_v17 = vor.u32 %v427_v4, %v426_v9  ;;  %v1421_v25 = vrot.slane %v424_v59, 4  ;;  %v1423_v26 = vrot.slane %v427_v4, 5  ;;  %v319_v32 = vadd.f32 %v1370_v14, %v307_v61 }
  0x21   : > { %v469_v23 = vsel %vm1409_vm8, %v415_v11, %v468_v63  ;;  %v466_v24 = vsel %vm1409_vm8, %v408_v12, %v465_v8  ;;  %v436_v30 = vor.u32 %v434_v19, %v433_v18  ;;  %v537_v34 = vor.u32 %v536_v7, %v535_v6 }
  0x22   : > { %470 = vst [vmem:[#allocation2 + $0xc] sm:$0xf] %v469_v23  ;;  %v475_v29 = vsel %vm1409_vm8, %v429_v17, %v474_v16  ;;  %v533_v35 = vor.u32 %v532_v15, %v531_v13  ;;  %v345_v36 = vsel %vm1336_vm3, 0, %v344_v20  ;;  %v396_v37 = vshrl.u32 %v1394_v50, 16 }
  0x23   : > { %500 = vrot.lane.b32.xlu1 %v1404_v62, %s1282_s30  ;;  %496 = vrot.lane.b32.xlu0 %v329_v52, %s1282_s30  ;;  %467 = vst [vmem:[#allocation2 + $0x8] sm:$0xf] %v466_v24  ;;  %v478_v39 = vsel %vm1409_vm8, %v436_v30, %v477_v27  ;;  %v372_v14 = vsel %vm1348_vm5, 0, %v371_v21  ;;  %v399_v40 = vshll.u32 %v1394_v50, 16  ;;  %v326_v41 = vmax.f32 %v318_v22, 0.0 }
  0x24   : > { %476 = vst [vmem:[#allocation2 + $0x14] sm:$0xf] %v475_v29  ;;  %v527_v42 = vrot.slane %v396_v37, 4  ;;  %v363_v43 = vsel %vm1336_vm3, 0, %v362_v28  ;;  %v390_v47 = vsel %vm1348_vm5, 0, %v389_v31  ;;  %v327_v48 = vmax.f32 %v319_v32, 0.0 }
  0x25   : > { %479 = vst [vmem:[#allocation2 + $0x18] sm:$0xf] %v478_v39  ;;  %v528_v45 = vrot.slane %v399_v40, 5  ;;  %v1443_v46 = vpack.c.bf16 %v326_v41, %v326_v41  ;;  %v538_v49 = vrot.slane %v537_v34, 4  ;;  %v534_v51 = vrot.slane %v533_v35, 4 }
  0x26   : > { %346 = vst [vmem:[#allocation2 + $0x4] sm:$0x1] %v345_v36  ;;  %v398_v52 = vrot.slane %v396_v37, 7  ;;  %v366_v50 = vsel %vm1336_vm3, 0, %v365_v33  ;;  %v1450_v56 = vpack.c.bf16 %v327_v48, %v327_v48  ;;  %v393_v57 = vsel %vm1348_vm5, 0, %v392_v38 }
  0x27   : > { %373 = vst [vmem:[#allocation2 + $0x4] sm:$0x8] %v372_v14  ;;  %v529_v53 = vor.u32 %v528_v45, %v527_v42  ;;  %v438_v55 = vshrl.u32 %v1443_v46, 16  ;;  %v354_v59 = vsel %vm1336_vm3, 0, %v353_v44  ;;  %v417_v60 = vshrl.u32 %v1404_v62, 16  ;;  %v1195_v45 = vld [vmem:[%s1627_s3 + $0xc] sm:$0xff] }
  0x28   : > { %364 = vst [vmem:[#allocation2 + $0x1c] sm:$0x1] %v363_v43  ;;  %v420_v61 = vshll.u32 %v1404_v62, 16  ;;  %v545_v63 = vor.u32 %v1423_v26, %v1421_v25  ;;  %v381_v4 = vsel %vm1348_vm5, 0, %v380_v58  ;;  %v401_v1 = vor.u32 %v399_v40, %v398_v52  ;;  %v1106_v38 = vld [vmem:[%s1627_s3 + $0x14] sm:$0xf] }
  0x29   : > { %391 = vst [vmem:[#allocation2 + $0x1c] sm:$0x8] %v390_v47  ;;  %v530_v0 = vrot.slane %v529_v53, 4  ;;  %v440_v2 = vrot.slane %v438_v55, 7  ;;  %v441_v6 = vshll.u32 %v1443_v46, 16  ;;  %v445_v62 = vshrl.u32 %v1450_v56, 16 }
  0x2a   : > { %367 = vst [vmem:[#allocation2 + $0x20] sm:$0x1] %v366_v50  ;;  %v539_v7 = vrot.slane %v417_v60, 4  ;;  %v540_v8 = vrot.slane %v420_v61, 5  ;;  %v448_v5 = vshll.u32 %v1450_v56, 16  ;;  %v419_v12 = vrot.slane %v417_v60, 7 }
  0x2b   : > { %563 = vrot.lane.b32.xlu1 %v538_v49, %s1283_s6  ;;  %561 = vrot.lane.b32.xlu0 %v534_v51, %s1283_s6  ;;  %394 = vst [vmem:[#allocation2 + $0x20] sm:$0x8] %v393_v57  ;;  %v443_v9 = vor.u32 %v441_v6, %v440_v2  ;;  %v447_v11 = vrot.slane %v445_v62, 7  ;;  %v546_v13 = vrot.slane %v545_v63, 4  ;;  %v547_v15 = vrot.slane %v431_v10, 4 }
  0x2c   : > { %559 = vrot.lane.b32.xlu2 %v530_v0, %s1283_s6  ;;  %355 = vst [vmem:[#allocation2 + $0x10] sm:$0x1] %v354_v59  ;;  %v548_v16 = vrot.slane %v434_v19, 5  ;;  %v541_v18 = vor.u32 %v540_v8, %v539_v7  ;;  %v551_v21 = vrot.slane %v438_v55, 4  ;;  %v552_v22 = vrot.slane %v441_v6, 5  ;;  %v1200_v55 = vld [vmem:[%s1627_s3 + $0x18] sm:$0xff] }
  0x2d   : > { %382 = vst [vmem:[#allocation2 + $0x10] sm:$0x8] %v381_v4  ;;  %v450_v23 = vor.u32 %v448_v5, %v447_v11  ;;  %v422_v27 = vor.u32 %v420_v61, %v419_v12  ;;  %v555_v34 = vrot.slane %v445_v62, 4  ;;  %v556_v35 = vrot.slane %v448_v5, 5  ;;  %v620_v39 = vld [vmem:[%s1627_s3 + $0x8] sm:$0xf] }
  0x2e   : > { %v462_v17 = vld [vmem:[#allocation2 + $0x4] sm:$0xf]  ;;  %v542_v25 = vrot.slane %v541_v18, 4  ;;  %v549_v19 = vor.u32 %v548_v16, %v547_v15  ;;  %v553_v28 = vor.u32 %v552_v22, %v551_v21  ;;  %vm518_vm9 = vcmask 126016   ;;  %v1157_v47 = vld [vmem:[%s1627_s3 + $0x20] sm:$0xf] }
  0x2f   : > { %v463_v20 = vsel %vm1409_vm8, %v401_v1, %v462_v17  ;;  %vm336_vm10 = vcmask 191488   ;;  %v1284_v37 = vmov 0   ;;  %v658_v14 = vunpack.c.l.b16 %v1106_v38 }
  0x30   : > { %464 = vst [vmem:[#allocation2 + $0x4] sm:$0xf] %v463_v20  ;;  %v480_v24 = vld [vmem:[#allocation2 + $0x1c] sm:$0xf]  ;;  %v550_v32 = vrot.slane %v549_v19, 4  ;;  %v554_v33 = vrot.slane %v553_v28, 4  ;;  %v733_v40 = vunpack.c.l.b16 %v620_v39  ;;  %v819_v49 = vunpack.c.l.b16 %v1157_v47 }
  0x31   : > { %v481_v26 = vsel %vm1409_vm8, %v443_v9, %v480_v24  ;;  %337 = vst.msk [vmem:[#allocation2] sm:$0xf] %vm336_vm10, %v1284_v37  ;;  %v660_v41 = vpack.c.b16 %v658_v14, %v658_v14  ;;  %vm675_vm11 = vcmask 1043456   ;;  %vm583_vm12 = vcmask 191616  }
  0x32   : > { %482 = vst [vmem:[#allocation2 + $0x1c] sm:$0xf] %v481_v26  ;;  %v483_v10 = vld [vmem:[#allocation2 + $0x20] sm:$0xf]  ;;  %v735_v42 = vpack.c.b16 %v733_v40, %v733_v40  ;;  %v821_v51 = vpack.c.b16 %v819_v49, %v819_v49  ;;  %vm584_vm13 = vsmask.f32 3328 }
  0x33   : > { %504 = vrot.lane.b32.xlu1 %v1396_v54, %s1282_s30  ;;  %567 = vrot.lane.b32.xlu0 %v546_v13, %s1283_s6  ;;  %v484_v29 = vsel %vm1409_vm8, %v450_v23, %v483_v10  ;;  %v557_v54 = vor.u32 %v556_v35, %v555_v34  ;;  %339 = vst.msk [vmem:[#allocation2 + $0x24] sm:$0xf] %vm336_vm10, %v1284_v37  ;;  %v677_v43 = vsel %vm675_vm11, %v660_v41, 0  ;;  %vm1515_vm14 = vmand %vm583_vm12, %vm584_vm13  ;;  %vm662_vm15 = vcmask 195584  }
  0x34   : > { %485 = vst [vmem:[#allocation2 + $0x20] sm:$0xf] %v484_v29  ;;  %v471_v30 = vld [vmem:[#allocation2 + $0x10] sm:$0xf]  ;;  %565 = vrot.lane.b32.xlu2 %v542_v25, %s1283_s6  ;;  %v750_v44 = vsel %vm675_vm11, %v735_v42, 0  ;;  %685 = vmatpush.bf16.msra.mxu0 %v677_v43  ;;  %v836_v52 = vsel %vm675_vm11, %v821_v51, 0 }
  0x35   : > { %v472_v31 = vsel %vm1409_vm8, %v422_v27, %v471_v30  ;;  %v558_v36 = vrot.slane %v557_v54, 4  ;;  %1220 = vmatpush.bf16.msra.mxu3 %v677_v43  ;;  %1222 = vmatpush.bf16.msra.mxu1 %v750_v44  ;;  %vm892_vm0 = vcmask 64512   ;;  %vm964_vm2 = vcmask 122880  }
  0x36   : > { %473 = vst [vmem:[#allocation2 + $0x10] sm:$0xf] %v472_v31  ;;  %1224 = vmatpush.bf16.msra.mxu2 %v836_v52 }
  0x38   : > { %686 = vmatpush.bf16.msra.mxu0 %v1195_v45 }
  0x39   : > { %1221 = vmatpush.bf16.msra.mxu3 %v1195_v45 }
  0x3a   : > { %1225 = vmatpush.bf16.msra.mxu2 %v1200_v55 }
  0x3b   : > { %569 = vrot.lane.b32.xlu0 %v550_v32, %s1283_s6  ;;  %571 = vrot.lane.b32.xlu1 %v554_v33, %s1283_s6 }
  0x3c   : > { %506 = vrot.lane.b32.xlu2 %v1443_v46, %s1282_s30  ;;  %v1190_v46 = vld [vmem:[%s1627_s3] sm:$0xff]  ;;  %758 = vmatpush.bf16.msrb.mxu0 %v750_v44 }
  0x3d   : > { %1223 = vmatpush.bf16.msra.mxu1 %v1190_v46 }
  0x40   : > { %759 = vmatpush.bf16.msrb.mxu0 %v1190_v46 }
  0x43   : > { %573 = vrot.lane.b32.xlu0 %v558_v36, %s1283_s6 }
  0x44   : > { %508 = vrot.lane.b32.xlu2 %v1450_v56, %s1282_s30 }
  0x76   : > { %v503_v3 = vpop.permute.xlu2 %502 }
  0x77   : > { %523 = vst.msk [vmem:[#allocation2 + $0x14] sm:$0xf] %vm518_vm9, %v503_v3 }
  0x7e   : > { %v598_v5 = vld [vmem:[#allocation2 + $0x14] sm:$0xf] }
  0x86   : > { %v560_v48 = vpop.permute.xlu2 %559 }
  0x8d   : > { %v499_v50 = vpop.permute.xlu1 %498  ;;  %v495_v53 = vpop.permute.xlu0 %494 }
  0x8e   : > { %521 = vst.msk [vmem:[#allocation2 + $0xc] sm:$0xf] %vm518_vm9, %v499_v50  ;;  %v566_v56 = vpop.permute.xlu2 %565 }
  0x8f   : > { %519 = vst.msk [vmem:[#allocation2 + $0x4] sm:$0xf] %vm518_vm9, %v495_v53 }
  0x95   : > { %v501_v58 = vpop.permute.xlu1 %500  ;;  %v497_v59 = vpop.permute.xlu0 %496  ;;  %v592_v2 = vld [vmem:[#allocation2 + $0xc] sm:$0xf] }
  0x96   : > { %522 = vst.msk [vmem:[#allocation2 + $0x10] sm:$0xf] %vm518_vm9, %v501_v58  ;;  %v586_v60 = vld [vmem:[#allocation2 + $0x4] sm:$0xf]  ;;  %v507_v61 = vpop.permute.xlu2 %506 }
  0x97   : > { %520 = vst.msk [vmem:[#allocation2 + $0x8] sm:$0xf] %vm518_vm9, %v497_v59  ;;  %v587_v63 = vsel %vm1515_vm14, %v560_v48, %v586_v60 }
  0x98   : > { %588 = vst [vmem:[#allocation2 + $0x4] sm:$0xf] %v587_v63 }
  0x99   : > { %525 = vst.msk [vmem:[#allocation2 + $0x1c] sm:$0xf] %vm518_vm9, %v507_v61 }
  0x9d   : > { %v564_v0 = vpop.permute.xlu1 %563  ;;  %v562_v4 = vpop.permute.xlu0 %561  ;;  %v595_v1 = vld [vmem:[#allocation2 + $0x10] sm:$0xf] }
  0x9e   : > { %v593_v6 = vsel %vm1515_vm14, %v564_v0, %v592_v2  ;;  %v589_v62 = vld [vmem:[#allocation2 + $0x8] sm:$0xf]  ;;  %v596_v7 = vsel %vm1515_vm14, %v566_v56, %v595_v1  ;;  %v509_v9 = vpop.permute.xlu2 %508 }
  0x9f   : > { %594 = vst [vmem:[#allocation2 + $0xc] sm:$0xf] %v593_v6  ;;  %v590_v8 = vsel %vm1515_vm14, %v562_v4, %v589_v62  ;;  %v1186_v28 = vld [vmem:[#allocation2] sm:$0xff] }
  0xa0   : > { %591 = vst [vmem:[#allocation2 + $0x8] sm:$0xf] %v590_v8  ;;  %v604_v18 = vld [vmem:[#allocation2 + $0x1c] sm:$0xf] }
  0xa1   : > { %597 = vst [vmem:[#allocation2 + $0x10] sm:$0xf] %v596_v7 }
  0xa2   : > { %526 = vst.msk [vmem:[#allocation2 + $0x20] sm:$0xf] %vm518_vm9, %v509_v9 }
  0xa5   : > { %v505_v11 = vpop.permute.xlu1 %504  ;;  %v568_v12 = vpop.permute.xlu0 %567 }
  0xa6   : > { %524 = vst.msk [vmem:[#allocation2 + $0x18] sm:$0xf] %vm518_vm9, %v505_v11  ;;  %v599_v13 = vsel %vm1515_vm14, %v568_v12, %v598_v5  ;;  %v1285_v5 = vmov 64.0  }
  0xa7   : > { %600 = vst [vmem:[#allocation2 + $0x14] sm:$0xf] %v599_v13  ;;  %v1191_v15 = vld [vmem:[#allocation2 + $0x4] sm:$0xff]  ;;  %1256 = vrcp.f32 %v1285_v5 }
  0xa8   : > { %v1187_v16 = vld [vmem:[#allocation2 + $0x8] sm:$0xff]  ;;  %1127 = vmatmul.msk.bf16.vlgmr.msra.gmra.mxu0 %vm662_vm15, %v1191_v15 }
  0xa9   : > { %v1192_v17 = vld [vmem:[#allocation2 + $0xc] sm:$0xff]  ;;  %1152 = vmatmul.msk.bf16.vlgmr.msra.gmra.mxu1 %vm662_vm15, %v1187_v16  ;;  %844 = vmatpush.bf16.msra.mxu0 %v836_v52  ;;  %v607_v26 = vld [vmem:[#allocation2 + $0x20] sm:$0xf] }
  0xaa   : > { %1128 = vmatmul.msk.bf16.vlgmr.msra.gmra.mxu3 %vm662_vm15, %v1192_v17  ;;  %v1196_v32 = vld [vmem:[#allocation2 + $0x8] sm:$0xff] }
  0xad   : > { %v601_v20 = vld [vmem:[#allocation2 + $0x18] sm:$0xf]  ;;  %v570_v21 = vpop.permute.xlu0 %569  ;;  %v572_v22 = vpop.permute.xlu1 %571  ;;  %845 = vmatpush.bf16.msra.mxu0 %v1200_v55 }
  0xae   : > { %v602_v23 = vsel %vm1515_vm14, %v570_v21, %v601_v20  ;;  %v1197_v24 = vld [vmem:[#allocation2 + $0x10] sm:$0xff]  ;;  %v605_v25 = vsel %vm1515_vm14, %v572_v22, %v604_v18 }
  0xaf   : > { %603 = vst [vmem:[#allocation2 + $0x18] sm:$0xf] %v602_v23  ;;  %1179 = vmatmul.msk.bf16.vlgmr.msra.gmra.mxu2 %vm662_vm15, %v1197_v24  ;;  %v1188_v29 = vld [vmem:[#allocation2 + $0x10] sm:$0xff]  ;;  %v1257_v23 = vpop.eup %1256 }
  0xb0   : > { %606 = vst [vmem:[#allocation2 + $0x1c] sm:$0xf] %v605_v25  ;;  %vm919_vm1 = vweird.f32 %v1257_v23 }
  0xb5   : > { %v574_v27 = vpop.permute.xlu0 %573 }
  0xb6   : > { %v608_v10 = vsel %vm1515_vm14, %v574_v27, %v607_v26  ;;  %v1193_v19 = vld [vmem:[#allocation2 + $0x14] sm:$0xff] }
  0xb7   : > { %609 = vst [vmem:[#allocation2 + $0x20] sm:$0xf] %v608_v10  ;;  %v1198_v30 = vld [vmem:[#allocation2 + $0x18] sm:$0xff] }
  0xb8   : > { %1151 = vmatmul.msk.bf16.vlgmr.msrb.gmra.mxu0 %vm662_vm15, %v1186_v28  ;;  %v1189_v31 = vld [vmem:[#allocation2 + $0x18] sm:$0xff] }
  0xb9   : > { %1153 = vmatmul.msk.bf16.gmra.mxu1 %vm662_vm15, %v1188_v29  ;;  %v915_v29 = vmul.f32 64.0, %v1257_v23 }
  0xba   : > { %1129 = vmatmul.msk.bf16.gmra.mxu3 %vm662_vm15, %v1193_v19 }
  0xbe   : > { %v1194_v33 = vld [vmem:[#allocation2 + $0x1c] sm:$0xff] }
  0xbf   : > { %1180 = vmatmul.msk.bf16.gmra.mxu2 %vm662_vm15, %v1198_v30  ;;  %v1199_v34 = vld [vmem:[#allocation2 + $0x20] sm:$0xff] }
  0xc8   : > { %1178 = vmatmul.msk.bf16.vlgmr.msra.gmra.mxu0 %vm662_vm15, %v1196_v32 }
  0xc9   : > { %1154 = vmatmul.msk.bf16.gmra.mxu1 %vm662_vm15, %v1189_v31 }
  0xca   : > { %1130 = vmatmul.msk.bf16.gmra.mxu3 %vm662_vm15, %v1194_v33 }
  0xcf   : > { %1181 = vmatmul.msk.bf16.gmra.mxu2 %vm662_vm15, %v1199_v34 }
 0x125   : > { %v688_v35 = vpop.f32.mrf.mxu0 }
 0x126   : > { %v766_v54 = vpop.f32.mrf.mxu1 }
 0x12d   : > { %v693_v36 = vpop.f32.mrf.mxu3  ;;  %v690_v3 = vpop.f32.mrf.mxu0 }
 0x12e   : > { %v768_v37 = vpop.f32.mrf.mxu1  ;;  %v767_v38 = vadd.f32 %v766_v54, %v693_v36  ;;  %v916_v54 = vsub.f32 1.0, %v915_v29 }
 0x132   : > { %v852_v39 = vpop.f32.mrf.mxu2 }
 0x133   : > { %v1552_v14 = vadd.f32 %v852_v39, %v767_v38 }
 0x135   : > { %v695_v40 = vpop.f32.mrf.mxu3  ;;  %v877_v41 = vpack.c.bf16 %v1552_v14, %v1552_v14  ;;  %v761_v42 = vpop.f32.mrf.mxu0  ;;  %v896_v15 = vsel %vm892_vm0, %v1552_v14, 0.0 }
 0x136   : > { %v769_v43 = vadd.f32 %v768_v37, %v695_v40  ;;  %v771_v44 = vpop.f32.mrf.mxu1  ;;  %v762_v53 = vadd.f32 %v761_v42, %v688_v35  ;;  %v917_v37 = vmul.f32 %v1257_v23, %v916_v54 }
 0x137   : > { %886 = vst.msk [vmem:[%s1559_s26 + $0x8] sm:$0xf] %vm459_vm6, %v877_v41 }
 0x138   : > { %v918_v40 = vadd.f32 %v1257_v23, %v917_v37 }
 0x13a   : > { %v854_v45 = vpop.f32.mrf.mxu2 }
 0x13b   : > { %v1565_v46 = vadd.f32 %v854_v45, %v769_v43  ;;  %v920_v43 = vsel %vm919_vm1, %v1257_v23, %v918_v40 }
 0x13d   : > { %v698_v47 = vpop.f32.mrf.mxu3  ;;  %v878_v48 = vpack.c.bf16 %v1565_v46, %v1565_v46  ;;  %v763_v49 = vpop.f32.mrf.mxu0  ;;  %v898_v20 = vsel %vm892_vm0, %v1565_v46, 0.0 }
 0x13e   : > { %v772_v51 = vadd.f32 %v771_v44, %v698_v47  ;;  %v773_v55 = vpop.f32.mrf.mxu1  ;;  %v764_v2 = vadd.f32 %v763_v49, %v690_v3 }
 0x13f   : > { %887 = vst.msk [vmem:[%s1559_s26 + $0xc] sm:$0xf] %vm459_vm6, %v878_v48 }
 0x142   : > { %v857_v52 = vpop.f32.mrf.mxu2 }
 0x143   : > { %v1571_v50 = vadd.f32 %v857_v52, %v772_v51 }
 0x145   : > { %v700_v56 = vpop.f32.mrf.mxu3  ;;  %v879_v57 = vpack.c.bf16 %v1571_v50, %v1571_v50  ;;  %v847_v58 = vpop.f32.mrf.mxu0  ;;  %v900_v24 = vsel %vm892_vm0, %v1571_v50, 0.0 }
 0x146   : > { %v867_v59 = vadd.f32 %v847_v58, %v762_v53  ;;  %v774_v61 = vadd.f32 %v773_v55, %v700_v56  ;;  %v776_v62 = vpop.f32.mrf.mxu1 }
 0x147   : > { %888 = vst.msk [vmem:[%s1559_s26 + $0x10] sm:$0xf] %vm459_vm6, %v879_v57 }
 0x148   : > { %v875_v60 = vpack.c.bf16 %v867_v59, %v867_v59  ;;  %v893_v8 = vsel %vm892_vm0, %v867_v59, 0.0 }
 0x14a   : > { %884 = vst.msk [vmem:[%s1559_s26] sm:$0xf] %vm459_vm6, %v875_v60  ;;  %v859_v63 = vpop.f32.mrf.mxu2 }
 0x14b   : > { %v872_v0 = vadd.f32 %v859_v63, %v774_v61 }
 0x14d   : > { %v703_v4 = vpop.f32.mrf.mxu3  ;;  %v880_v1 = vpack.c.bf16 %v872_v0, %v872_v0  ;;  %v849_v6 = vpop.f32.mrf.mxu0  ;;  %v902_v27 = vsel %vm892_vm0, %v872_v0, 0.0 }
 0x14e   : > { %v868_v7 = vadd.f32 %v849_v6, %v764_v2  ;;  %v777_v12 = vadd.f32 %v776_v62, %v703_v4  ;;  %v778_v10 = vpop.f32.mrf.mxu1 }
 0x14f   : > { %889 = vst.msk [vmem:[%s1559_s26 + $0x14] sm:$0xf] %vm459_vm6, %v880_v1 }
 0x150   : > { %v876_v9 = vpack.c.bf16 %v868_v7, %v868_v7  ;;  %v894_v11 = vsel %vm892_vm0, %v868_v7, 0.0 }
 0x151   : > { %v895_v13 = vadd.f32 %v894_v11, %v893_v8 }
 0x152   : > { %885 = vst.msk [vmem:[%s1559_s26 + $0x4] sm:$0xf] %vm459_vm6, %v876_v9  ;;  %v862_v16 = vpop.f32.mrf.mxu2 }
 0x153   : > { %v897_v17 = vadd.f32 %v896_v15, %v895_v13  ;;  %v873_v18 = vadd.f32 %v862_v16, %v777_v12 }
 0x155   : > { %v899_v21 = vadd.f32 %v898_v20, %v897_v17  ;;  %v881_v22 = vpack.c.bf16 %v873_v18, %v873_v18  ;;  %v705_v25 = vpop.f32.mrf.mxu3  ;;  %v904_v31 = vsel %vm892_vm0, %v873_v18, 0.0 }
 0x156   : > { %v779_v19 = vadd.f32 %v778_v10, %v705_v25 }
 0x157   : > { %890 = vst.msk [vmem:[%s1559_s26 + $0x18] sm:$0xf] %vm459_vm6, %v881_v22  ;;  %v901_v26 = vadd.f32 %v900_v24, %v899_v21 }
 0x159   : > { %v903_v28 = vadd.f32 %v902_v27, %v901_v26 }
 0x15a   : > { %v864_v30 = vpop.f32.mrf.mxu2 }
 0x15b   : > { %v874_v32 = vadd.f32 %v864_v30, %v779_v19  ;;  %v905_v33 = vadd.f32 %v904_v31, %v903_v28 }
 0x15d   : > { %v882_v34 = vpack.c.bf16 %v874_v32, %v874_v32  ;;  %v906_v35 = vsel %vm892_vm0, %v874_v32, 0.0 }
 0x15e   : > { %v907_v36 = vadd.f32 %v906_v35, %v905_v33 }
 0x15f   : > { %891 = vst.msk [vmem:[%s1559_s26 + $0x1c] sm:$0xf] %vm459_vm6, %v882_v34 }
 0x160   : > { %v908_v3 = vrot.slane %v907_v36, 4 }
 0x162   : > { %v909_v38 = vadd.f32 %v908_v3, %v907_v36 }
 0x164   : > { %v910_v39 = vrot.slane %v909_v38, 2 }
 0x166   : > { %v911_v41 = vadd.f32 %v910_v39, %v909_v38 }
 0x168   : > { %v912_v42 = vrot.slane %v911_v41, 1 }
 0x16a   : > { %v913_v44 = vadd.f32 %v912_v42, %v911_v41 }
 0x16c   : > { %v921_v45 = vmul.f32 %v920_v43, %v913_v44 }
 0x16e   : > { %v922_v47 = vsub.f32 %v867_v59, %v921_v45  ;;  %v923_v48 = vsub.f32 %v868_v7, %v921_v45  ;;  %v924_v49 = vsub.f32 %v1552_v14, %v921_v45  ;;  %v925_v51 = vsub.f32 %v1565_v46, %v921_v45 }
 0x16f   : > { %v926_v52 = vsub.f32 %v1571_v50, %v921_v45  ;;  %v927_v57 = vsub.f32 %v872_v0, %v921_v45  ;;  %v928_v2 = vsub.f32 %v873_v18, %v921_v45  ;;  %v929_v14 = vsub.f32 %v874_v32, %v921_v45 }
 0x170   : > { %v930_v53 = vmul.f32 %v922_v47, %v922_v47  ;;  %v931_v55 = vmul.f32 %v923_v48, %v923_v48  ;;  %v932_v56 = vmul.f32 %v924_v49, %v924_v49  ;;  %v933_v58 = vmul.f32 %v925_v51, %v925_v51 }
 0x171   : > { %v934_v4 = vmul.f32 %v926_v52, %v926_v52  ;;  %v935_v6 = vmul.f32 %v927_v57, %v927_v57  ;;  %v936_v62 = vmul.f32 %v928_v2, %v928_v2  ;;  %v937_v8 = vmul.f32 %v929_v14, %v929_v14 }
 0x172   : > { %v938_v60 = vsel %vm892_vm0, %v930_v53, 0.0  ;;  %v939_v61 = vsel %vm892_vm0, %v931_v55, 0.0  ;;  %v941_v59 = vsel %vm892_vm0, %v932_v56, 0.0  ;;  %v943_v46 = vsel %vm892_vm0, %v933_v58, 0.0 }
 0x173   : > { %v940_v63 = vadd.f32 %v939_v61, %v938_v60  ;;  %v945_v7 = vsel %vm892_vm0, %v934_v4, 0.0  ;;  %v947_v9 = vsel %vm892_vm0, %v935_v6, 0.0  ;;  %v949_v5 = vsel %vm892_vm0, %v936_v62, 0.0 }
 0x174   : > { %v951_v13 = vsel %vm892_vm0, %v937_v8, 0.0 }
 0x175   : > { %v942_v1 = vadd.f32 %v941_v59, %v940_v63 }
 0x177   : > { %v944_v50 = vadd.f32 %v943_v46, %v942_v1 }
 0x179   : > { %v946_v0 = vadd.f32 %v945_v7, %v944_v50 }
 0x17b   : > { %v948_v11 = vadd.f32 %v947_v9, %v946_v0 }
 0x17d   : > { %v950_v12 = vadd.f32 %v949_v5, %v948_v11 }
 0x17f   : > { %v952_v15 = vadd.f32 %v951_v13, %v950_v12 }
 0x181   : > { %v953_v16 = vrot.slane %v952_v15, 4 }
 0x183   : > { %v954_v17 = vadd.f32 %v953_v16, %v952_v15 }
 0x185   : > { %v955_v18 = vrot.slane %v954_v17, 2 }
 0x187   : > { %v956_v20 = vadd.f32 %v955_v18, %v954_v17 }
 0x189   : > { %v957_v21 = vrot.slane %v956_v20, 1 }
 0x18b   : > { %v958_v22 = vadd.f32 %v957_v21, %v956_v20 }
 0x18d   : > { %960 = vrot.lane.b32.xlu1 %v958_v22, %s1282_s30 }
 0x1ff   : > { %v961_v23 = vpop.permute.xlu1 %960 }
 0x200   : > { %v963_v24 = vsel %vm892_vm0, %v913_v44, %v961_v23 }
 0x201   : > { %965 = vst.msk [vmem:[%s278_s28] sm:$0x1] %vm964_vm2, %v963_v24 }
 0x202 PF: > { %s16_s20 = sadd.s32 1, %s1280_s20   ;;  %s1638_s18 = smov %s1276_s19 }
 0x203   : > { %p13_p5 = scmp.ge.s32.totalorder %s16_s20, 4   ;;  %s1639_s19 = smov %s1641_s21 }
 0x205   :  { %15 = sbr.rel (!%p13_p5) target bundleno = 2 (0x2), region = 86 }

</bundles_post_ra>
